<compile_context>
chip_gen: v7x
topology: tpu7x:2x2x1
jax: 0.10.0
libtpu: 0.0.40
codegen_flags: <defaults>
</compile_context>

<pallas_src>
import functools
import math

import jax
import jax.numpy as jnp
from jax.experimental import pallas as pl
from jax.experimental.pallas import tpu as pltpu


def _decoder_layer_kernel(
    xf_ref, mem_ref,
    sa_wq_ref, sa_wkv_ref, sa_wo_ref,
    ca_wq_ref, ca_wkv_ref, ca_wo_ref,
    w1_ref, w2_ref, kvb_ref, vecs_ref, b1_ref,
    out_ref,
    kv_self_ref, kv_cross_ref, attn_ref,
    *, num_heads: int, head_dim: int, d_model: int, tile_t: int,
    eps: float = 1e-5,
):
    """One grid step = (batch element, query tile).

    vecs rows: 0 sa_bq(*scale), 1 sa_out_b, 2 ca_bq(*scale), 3 ca_out_b,
               4 b2, 5 g1, 6 be1, 7 g2, 8 be2, 9 g3, 10 be3
    kvb rows:  0 [sa_bk | sa_bv], 1 [ca_bk | ca_bv]
    """
    f32 = jnp.float32
    D = d_model
    dh = head_dim
    cdt = sa_wq_ref.dtype                          # MXU compute dtype (= weight dtype)
    t = pl.program_id(1)

    vecs = vecs_ref[...].astype(f32)               # (11, D), tiny

    # ---- K/V projections hoisted: once per batch element, carried in scratch ----
    @pl.when(t == 0)
    def _():
        kvb = kvb_ref[...].astype(f32)                                     # (2, 2D)
        xf = xf_ref[0].astype(cdt)                                         # (T, D)
        mem = mem_ref[0].astype(cdt)                                       # (S, D)
        kv_s = jnp.dot(xf, sa_wkv_ref[...], preferred_element_type=f32) + kvb[0:1]
        kv_self_ref[...] = kv_s.astype(kv_self_ref.dtype)
        kv_c = jnp.dot(mem, ca_wkv_ref[...], preferred_element_type=f32) + kvb[1:2]
        kv_cross_ref[...] = kv_c.astype(kv_cross_ref.dtype)

    def layer_norm(h, g_row, b_row):
        g = vecs[g_row:g_row + 1]
        b = vecs[b_row:b_row + 1]
        mu = jnp.mean(h, axis=-1, keepdims=True)
        xc = h - mu
        var = jnp.mean(xc * xc, axis=-1, keepdims=True)   # stable two-pass variance
        return xc * jax.lax.rsqrt(var + eps) * g + b

    def attention(x_in, wq_ref, kv_ref, wo_ref, bq_row, bo_row):
        # Fused full-width Q projection; 1/sqrt(dh) and bq pre-folded in wrapper.
        q = jnp.dot(x_in.astype(cdt), wq_ref[...], preferred_element_type=f32)
        q = (q + vecs[bq_row:bq_row + 1]).astype(cdt)                      # (tile_t, D)
        for h in range(num_heads):
            c0 = h * dh
            qh = q[:, c0:c0 + dh]                                          # (tile_t, dh)
            kh = kv_ref[:, c0:c0 + dh]                                     # (L, dh)
            vh = kv_ref[:, D + c0:D + c0 + dh]                             # (L, dh)
            s = jax.lax.dot_general(qh, kh, (((1,), (1,)), ((), ())),
                                    preferred_element_type=f32)            # (tile_t, L)
            m = jnp.max(s, axis=-1, keepdims=True)
            p = jnp.exp(s - m)
            l = jnp.sum(p, axis=-1, keepdims=True)
            o = jnp.dot(p.astype(cdt), vh, preferred_element_type=f32)     # (tile_t, dh)
            # deferred softmax normalization (EUP reciprocal); write head slice
            attn_ref[:, c0:c0 + dh] = (o * pl.reciprocal(l, approx=True)
                                       ).astype(attn_ref.dtype)
        concat = attn_ref[...].astype(cdt)                                 # (tile_t, D)
        # Fused full-width output projection (K = D contraction depth).
        out = jnp.dot(concat, wo_ref[...], preferred_element_type=f32)
        return out + vecs[bo_row:bo_row + 1]

    start = pl.multiple_of(t * tile_t, tile_t)
    xq = xf_ref[0, pl.ds(start, tile_t), :].astype(f32)                    # query tile

    # self-attention + residual + norm1 (dropout == identity)
    h1 = layer_norm(xq + attention(xq, sa_wq_ref, kv_self_ref, sa_wo_ref, 0, 1), 5, 6)
    # cross-attention + residual + norm2
    h2 = layer_norm(h1 + attention(h1, ca_wq_ref, kv_cross_ref, ca_wo_ref, 2, 3), 7, 8)
    # feed-forward + residual + norm3
    ff = jnp.dot(h2.astype(cdt), w1_ref[...], preferred_element_type=f32)
    ff = jnp.maximum(ff + b1_ref[...].astype(f32), 0.0)
    ff = jnp.dot(ff.astype(cdt), w2_ref[...], preferred_element_type=f32)
    ff = ff + vecs[4:5]
    out = layer_norm(h2 + ff, 9, 10)

    out_ref[0] = out.astype(out_ref.dtype)


def _pick_tile(t):
    for cand in (512, 256, 128):
        if t % cand == 0:
            return cand
    return t


def decoder_layer_forward(x, memory, params, num_heads,
                          tgt_mask=None, tgt_key_padding_mask=None,
                          memory_key_padding_mask=None, compute_dtype=None):
    if (tgt_mask is not None or tgt_key_padding_mask is not None
            or memory_key_padding_mask is not None):
        # TODO(synk): attention masks (causal / key-padding) are not implemented.
        raise NotImplementedError("masks are not supported by this Pallas kernel")

    B, T, D = x.shape
    Bm, S, Dm = memory.shape
    assert Bm == B and Dm == D, "x / memory shape mismatch"
    assert D % num_heads == 0, "d_model must be divisible by num_heads"
    dh = D // num_heads
    DFF = params['w1'].shape[0]
    cdt = jnp.dtype(compute_dtype) if compute_dtype is not None else x.dtype
    scale = 1.0 / math.sqrt(dh)
    f32 = jnp.float32

    def prep_attn(in_w, in_b, out_w):
        # PyTorch packed MHA params -> matmul-ready full-width layouts.
        wq = (in_w[:D].T * scale).astype(cdt)                                   # (D, D)
        wkv = jnp.concatenate([in_w[D:2 * D].T, in_w[2 * D:].T], 1).astype(cdt)  # (D, 2D)
        wo = out_w.T.astype(cdt)                                                # (D, D)
        bq = (in_b[:D] * scale).astype(f32)
        bkv = in_b[D:].astype(f32)                                              # (2D,)
        return wq, wkv, wo, bq, bkv

    sa_wq, sa_wkv, sa_wo, sa_bq, sa_bkv = prep_attn(
        params['sa_in_w'], params['sa_in_b'], params['sa_out_w'])
    ca_wq, ca_wkv, ca_wo, ca_bq, ca_bkv = prep_attn(
        params['ca_in_w'], params['ca_in_b'], params['ca_out_w'])
    w1t = params['w1'].T.astype(cdt)                                            # (D, DFF)
    w2t = params['w2'].T.astype(cdt)                                            # (DFF, D)
    b1 = params['b1'].reshape(1, DFF).astype(f32)
    kvb = jnp.stack([sa_bkv, ca_bkv], axis=0)                                   # (2, 2D)
    vecs = jnp.stack(
        [sa_bq, params['sa_out_b'].astype(f32), ca_bq, params['ca_out_b'].astype(f32),
         params['b2'].astype(f32), params['g1'].astype(f32), params['be1'].astype(f32),
         params['g2'].astype(f32), params['be2'].astype(f32),
         params['g3'].astype(f32), params['be3'].astype(f32)], axis=0)          # (11, D)

    tile_t = _pick_tile(T)
    n_t = T // tile_t

    weights = [sa_wq, sa_wkv, sa_wo, ca_wq, ca_wkv, ca_wo, w1t, w2t, kvb, vecs, b1]

    in_specs = [
        pl.BlockSpec((1, T, D), lambda b, t: (b, 0, 0)),     # full target sequence
        pl.BlockSpec((1, S, D), lambda b, t: (b, 0, 0)),     # full encoder memory
    ] + [pl.BlockSpec(w.shape, lambda b, t: (0, 0)) for w in weights]

    kernel = functools.partial(_decoder_layer_kernel, num_heads=num_heads,
                               head_dim=dh, d_model=D, tile_t=tile_t)

    # Rough working-set estimate -> scoped-VMEM request (capped for v7x headroom).
    csize = jnp.dtype(cdt).itemsize
    weight_bytes = sum(int(w.size) * w.dtype.itemsize for w in weights)
    io_bytes = (T * D + S * D + 2 * tile_t * D) * x.dtype.itemsize
    scratch_bytes = (T + S) * 2 * D * csize + tile_t * D * 4
    interm_bytes = 8 * tile_t * max(DFF, 2 * D, T, S) * 4
    est = 2 * (weight_bytes + io_bytes) + scratch_bytes + interm_bytes
    vmem_limit = int(max(32 * 1024 * 1024, min(int(1.25 * est), 56 * 1024 * 1024)))

    flops = int(B * ((12 * T + 4 * S) * D * D + 4 * T * (T + S) * D + 4 * T * D * DFF))
    transcendentals = int(B * num_heads * T * (T + S))
    bytes_accessed = int(weight_bytes + 3 * x.size * x.dtype.itemsize
                         + memory.size * memory.dtype.itemsize)

    return pl.pallas_call(
        kernel,
        out_shape=jax.ShapeDtypeStruct((B, T, D), x.dtype),
        grid_spec=pltpu.PrefetchScalarGridSpec(
            num_scalar_prefetch=0,
            grid=(B, n_t),
            in_specs=in_specs,
            out_specs=pl.BlockSpec((1, tile_t, D), lambda b, t: (b, t, 0)),
            scratch_shapes=[pltpu.VMEM((T, 2 * D), cdt),      # self-attn K|V carry
                            pltpu.VMEM((S, 2 * D), cdt),      # cross-attn K|V carry
                            pltpu.VMEM((tile_t, D), jnp.float32)],  # head-concat buffer
        ),
        compiler_params=pltpu.CompilerParams(
            # tile axis is "arbitrary": K/V scratch is carried across query tiles.
            dimension_semantics=("parallel", "arbitrary"),
            vmem_limit_bytes=vmem_limit),
        cost_estimate=pl.CostEstimate(flops=flops, transcendentals=transcendentals,
                                      bytes_accessed=bytes_accessed),
    )(x, memory, *weights)


def ref_forward(x, memory, params, num_heads):
    """Pure-JAX reference (same math as the PyTorch module in eval mode, no masks)."""
    def mha(q_in, kv_in, in_w, in_b, out_w, out_b):
        Bn, Tn, D = q_in.shape
        Sn = kv_in.shape[1]
        dh = D // num_heads
        q = q_in @ in_w[:D].T + in_b[:D]
        k = kv_in @ in_w[D:2 * D].T + in_b[D:2 * D]
        v = kv_in @ in_w[2 * D:].T + in_b[2 * D:]
        qh = q.reshape(Bn, Tn, num_heads, dh).transpose(0, 2, 1, 3)
        kh = k.reshape(Bn, Sn, num_heads, dh).transpose(0, 2, 1, 3)
        vh = v.reshape(Bn, Sn, num_heads, dh).transpose(0, 2, 1, 3)
        s = (qh @ kh.transpose(0, 1, 3, 2)) / jnp.sqrt(float(dh))
        p = jax.nn.softmax(s, axis=-1)
        o = (p @ vh).transpose(0, 2, 1, 3).reshape(Bn, Tn, D)
        return o @ out_w.T + out_b

    def ln(h, g, b):
        mu = h.mean(-1, keepdims=True)
        var = ((h - mu) ** 2).mean(-1, keepdims=True)
        return (h - mu) / jnp.sqrt(var + 1e-5) * g + b

    h = ln(x + mha(x, x, params['sa_in_w'], params['sa_in_b'],
                   params['sa_out_w'], params['sa_out_b']), params['g1'], params['be1'])
    h = ln(h + mha(h, memory, params['ca_in_w'], params['ca_in_b'],
                   params['ca_out_w'], params['ca_out_b']), params['g2'], params['be2'])
    ff = jnp.maximum(h @ params['w1'].T + params['b1'], 0.0) @ params['w2'].T + params['b2']
    return ln(h + ff, params['g3'], params['be3'])


if __name__ == "__main__":
    B, T, S = 2, 8, 8
    D, H, DFF = 32, 4, 64

    key = jax.random.PRNGKey(0)
    ks = jax.random.split(key, 16)

    params = {
        # self attention (PyTorch MultiheadAttention packed in_proj layout)
        'sa_in_w': 0.05 * jax.random.normal(ks[0], (3 * D, D), jnp.float32),
        'sa_in_b': 0.05 * jax.random.normal(ks[1], (3 * D,), jnp.float32),
        'sa_out_w': 0.05 * jax.random.normal(ks[2], (D, D), jnp.float32),
        'sa_out_b': 0.05 * jax.random.normal(ks[3], (D,), jnp.float32),
        # encoder-decoder attention
        'ca_in_w': 0.05 * jax.random.normal(ks[4], (3 * D, D), jnp.float32),
        'ca_in_b': 0.05 * jax.random.normal(ks[5], (3 * D,), jnp.float32),
        'ca_out_w': 0.05 * jax.random.normal(ks[6], (D, D), jnp.float32),
        'ca_out_b': 0.05 * jax.random.normal(ks[7], (D,), jnp.float32),
        # feed forward
        'w1': 0.05 * jax.random.normal(ks[8], (DFF, D), jnp.float32),
        'b1': 0.05 * jax.random.normal(ks[9], (DFF,), jnp.float32),
        'w2': 0.05 * jax.random.normal(ks[10], (D, DFF), jnp.float32),
        'b2': 0.05 * jax.random.normal(ks[11], (D,), jnp.float32),
        # layer norms (PyTorch default init: gamma=1, beta=0)
        'g1': jnp.ones((D,), jnp.float32), 'be1': jnp.zeros((D,), jnp.float32),
        'g2': jnp.ones((D,), jnp.float32), 'be2': jnp.zeros((D,), jnp.float32),
        'g3': jnp.ones((D,), jnp.float32), 'be3': jnp.zeros((D,), jnp.float32),
    }

    x = jax.random.normal(ks[12], (B, T, D), jnp.float32)
    memory = jax.random.normal(ks[13], (B, S, D), jnp.float32)

    out = decoder_layer_forward(x, memory, params, H)
    out = jax.block_until_ready(out)

    ref = ref_forward(x, memory, params, H)
    assert out.shape == (B, T, D)
    assert out.dtype == x.dtype
    assert jnp.allclose(out, ref, atol=2e-3, rtol=2e-3), "mismatch vs JAX reference"

    print("KERNEL_OK")
</pallas_src>

<mosaic_0001>
module attributes {stable_mosaic.version = 11 : i64} {
  func.func @_decoder_layer_kernel(%arg0: i32, %arg1: i32, %arg2: memref<1x8x32xf32, #tpu.memory_space<vmem>>, %arg3: memref<1x8x32xf32, #tpu.memory_space<vmem>>, %arg4: memref<32x32xf32, #tpu.memory_space<vmem>>, %arg5: memref<32x64xf32, #tpu.memory_space<vmem>>, %arg6: memref<32x32xf32, #tpu.memory_space<vmem>>, %arg7: memref<32x32xf32, #tpu.memory_space<vmem>>, %arg8: memref<32x64xf32, #tpu.memory_space<vmem>>, %arg9: memref<32x32xf32, #tpu.memory_space<vmem>>, %arg10: memref<32x64xf32, #tpu.memory_space<vmem>>, %arg11: memref<64x32xf32, #tpu.memory_space<vmem>>, %arg12: memref<2x64xf32, #tpu.memory_space<vmem>>, %arg13: memref<11x32xf32, #tpu.memory_space<vmem>>, %arg14: memref<1x64xf32, #tpu.memory_space<vmem>>, %arg15: memref<1x8x32xf32, #tpu.memory_space<vmem>>, %arg16: memref<8x64xf32, #tpu.memory_space<vmem>>, %arg17: memref<8x64xf32, #tpu.memory_space<vmem>>, %arg18: memref<8x32xf32, #tpu.memory_space<vmem>>) attributes {dimension_semantics = [#tpu.dimension_semantics<parallel>, #tpu.dimension_semantics<arbitrary>], iteration_bounds = array<i64: 2, 1>, scalar_prefetch = 0 : i64, scratch_operands = 3 : i64, tpu.core_type = #tpu.core_type<tc>, window_params = [{transform_indices = @transform_0, window_bounds = array<i64: 1, 8, 32>}, {transform_indices = @transform_1, window_bounds = array<i64: 1, 8, 32>}, {pipeline_mode = #tpu.pipeline_mode<synchronous>, transform_indices = @transform_2, window_bounds = array<i64: 32, 32>}, {pipeline_mode = #tpu.pipeline_mode<synchronous>, transform_indices = @transform_3, window_bounds = array<i64: 32, 64>}, {pipeline_mode = #tpu.pipeline_mode<synchronous>, transform_indices = @transform_4, window_bounds = array<i64: 32, 32>}, {pipeline_mode = #tpu.pipeline_mode<synchronous>, transform_indices = @transform_5, window_bounds = array<i64: 32, 32>}, {pipeline_mode = #tpu.pipeline_mode<synchronous>, transform_indices = @transform_6, window_bounds = array<i64: 32, 64>}, {pipeline_mode = #tpu.pipeline_mode<synchronous>, transform_indices = @transform_7, window_bounds = array<i64: 32, 32>}, {pipeline_mode = #tpu.pipeline_mode<synchronous>, transform_indices = @transform_8, window_bounds = array<i64: 32, 64>}, {pipeline_mode = #tpu.pipeline_mode<synchronous>, transform_indices = @transform_9, window_bounds = array<i64: 64, 32>}, {pipeline_mode = #tpu.pipeline_mode<synchronous>, transform_indices = @transform_10, window_bounds = array<i64: 2, 64>}, {pipeline_mode = #tpu.pipeline_mode<synchronous>, transform_indices = @transform_11, window_bounds = array<i64: 11, 32>}, {pipeline_mode = #tpu.pipeline_mode<synchronous>, transform_indices = @transform_12, window_bounds = array<i64: 1, 64>}, {transform_indices = @transform_13, window_bounds = array<i64: 1, 8, 32>}]} {
    %c0 = arith.constant 0 : index
    %c0_0 = arith.constant 0 : index
    %0 = vector.load %arg13[%c0, %c0_0] : memref<11x32xf32, #tpu.memory_space<vmem>>, vector<11x32xf32>
    %c0_i32 = arith.constant 0 : i32
    %1 = arith.cmpi eq, %arg1, %c0_i32 : i32
    %2 = arith.extui %1 : i1 to i32
    %c0_i32_1 = arith.constant 0 : i32
    %3 = arith.cmpi ne, %2, %c0_i32_1 : i32
    scf.if %3 {
      %c0_119 = arith.constant 0 : index
      %c0_120 = arith.constant 0 : index
      %243 = vector.load %arg12[%c0_119, %c0_120] : memref<2x64xf32, #tpu.memory_space<vmem>>, vector<2x64xf32>
      %c0_121 = arith.constant 0 : index
      %c0_122 = arith.constant 0 : index
      %c0_123 = arith.constant 0 : index
      %244 = vector.load %arg2[%c0_121, %c0_122, %c0_123] : memref<1x8x32xf32, #tpu.memory_space<vmem>>, vector<1x8x32xf32>
      %245 = vector.shape_cast %244 : vector<1x8x32xf32> to vector<8x32xf32>
      %c0_124 = arith.constant 0 : index
      %c0_125 = arith.constant 0 : index
      %c0_126 = arith.constant 0 : index
      %246 = vector.load %arg3[%c0_124, %c0_125, %c0_126] : memref<1x8x32xf32, #tpu.memory_space<vmem>>, vector<1x8x32xf32>
      %247 = vector.shape_cast %246 : vector<1x8x32xf32> to vector<8x32xf32>
      %c0_127 = arith.constant 0 : index
      %c0_128 = arith.constant 0 : index
      %248 = vector.load %arg5[%c0_127, %c0_128] : memref<32x64xf32, #tpu.memory_space<vmem>>, vector<32x64xf32>
      %cst_129 = arith.constant dense<0.000000e+00> : vector<8x64xf32>
      %249 = tpu.matmul %245, %248, %cst_129 {dimension_numbers = #tpu.dot_dimension_numbers<[1], [0], [0], [1], [0, 0, 1, 1], [], []>} : vector<8x32xf32>, vector<32x64xf32>, vector<8x64xf32> -> vector<8x64xf32>
      %250 = vector.extract_strided_slice %243 {offsets = [0, 0], sizes = [1, 64], strides = [1, 1]} : vector<2x64xf32> to vector<1x64xf32>
      %251 = vector.broadcast %250 : vector<1x64xf32> to vector<8x64xf32>
      %252 = arith.addf %249, %251 : vector<8x64xf32>
      %c0_130 = arith.constant 0 : index
      %c0_131 = arith.constant 0 : index
      %253 = vector.load %arg16[%c0_130, %c0_131] : memref<8x64xf32, #tpu.memory_space<vmem>>, vector<8x64xf32>
      tpu.vector_store %arg16[%c0_130, %c0_131], %252 {strides = array<i32>} : memref<8x64xf32, #tpu.memory_space<vmem>>, vector<8x64xf32>,
      %c0_132 = arith.constant 0 : index
      %c0_133 = arith.constant 0 : index
      %254 = vector.load %arg8[%c0_132, %c0_133] : memref<32x64xf32, #tpu.memory_space<vmem>>, vector<32x64xf32>
      %cst_134 = arith.constant dense<0.000000e+00> : vector<8x64xf32>
      %255 = tpu.matmul %247, %254, %cst_134 {dimension_numbers = #tpu.dot_dimension_numbers<[1], [0], [0], [1], [0, 0, 1, 1], [], []>} : vector<8x32xf32>, vector<32x64xf32>, vector<8x64xf32> -> vector<8x64xf32>
      %256 = vector.extract_strided_slice %243 {offsets = [1, 0], sizes = [1, 64], strides = [1, 1]} : vector<2x64xf32> to vector<1x64xf32>
      %257 = vector.broadcast %256 : vector<1x64xf32> to vector<8x64xf32>
      %258 = arith.addf %255, %257 : vector<8x64xf32>
      %c0_135 = arith.constant 0 : index
      %c0_136 = arith.constant 0 : index
      %259 = vector.load %arg17[%c0_135, %c0_136] : memref<8x64xf32, #tpu.memory_space<vmem>>, vector<8x64xf32>
      tpu.vector_store %arg17[%c0_135, %c0_136], %258 {strides = array<i32>} : memref<8x64xf32, #tpu.memory_space<vmem>>, vector<8x64xf32>,
    } else {
    }
    %c8_i32 = arith.constant 8 : i32
    %4 = arith.muli %arg1, %c8_i32 : i32
    %5 = tpu.assume_multiple %4, 8 : i32
    %c0_2 = arith.constant 0 : index
    %6 = arith.index_cast %5 : i32 to index
    %c0_3 = arith.constant 0 : index
    %7 = vector.load %arg2[%c0_2, %6, %c0_3] : memref<1x8x32xf32, #tpu.memory_space<vmem>>, vector<1x8x32xf32>
    %8 = vector.shape_cast %7 : vector<1x8x32xf32> to vector<8x32xf32>
    %c0_4 = arith.constant 0 : index
    %c0_5 = arith.constant 0 : index
    %9 = vector.load %arg4[%c0_4, %c0_5] : memref<32x32xf32, #tpu.memory_space<vmem>>, vector<32x32xf32>
    %cst = arith.constant dense<0.000000e+00> : vector<8x32xf32>
    %10 = tpu.matmul %8, %9, %cst {dimension_numbers = #tpu.dot_dimension_numbers<[1], [0], [0], [1], [0, 0, 1, 1], [], []>} : vector<8x32xf32>, vector<32x32xf32>, vector<8x32xf32> -> vector<8x32xf32>
    %11 = vector.extract_strided_slice %0 {offsets = [0, 0], sizes = [1, 32], strides = [1, 1]} : vector<11x32xf32> to vector<1x32xf32>
    %12 = vector.broadcast %11 : vector<1x32xf32> to vector<8x32xf32>
    %13 = arith.addf %10, %12 : vector<8x32xf32>
    %14 = vector.extract_strided_slice %13 {offsets = [0, 0], sizes = [8, 8], strides = [1, 1]} : vector<8x32xf32> to vector<8x8xf32>
    %c0_6 = arith.constant 0 : index
    %c0_7 = arith.constant 0 : index
    %15 = vector.load %arg16[%c0_6, %c0_7] : memref<8x64xf32, #tpu.memory_space<vmem>>, vector<8x8xf32>
    %c0_8 = arith.constant 0 : index
    %c32 = arith.constant 32 : index
    %16 = vector.load %arg16[%c0_8, %c32] : memref<8x64xf32, #tpu.memory_space<vmem>>, vector<8x8xf32>
    %cst_9 = arith.constant dense<0.000000e+00> : vector<8x8xf32>
    %17 = tpu.matmul %14, %15, %cst_9 {dimension_numbers = #tpu.dot_dimension_numbers<[1], [1], [0], [0], [0, 0, 1, 0], [], []>} : vector<8x8xf32>, vector<8x8xf32>, vector<8x8xf32> -> vector<8x8xf32>
    %cst_10 = arith.constant dense<0xFF800000> : vector<8xf32>
    %18 = vector.multi_reduction <maximumf>, %17, %cst_10 [1] : vector<8x8xf32> to vector<8xf32>
    %19 = vector.shape_cast %18 : vector<8xf32> to vector<8x1xf32>
    %20 = vector.broadcast %19 : vector<8x1xf32> to vector<8x8xf32>
    %21 = arith.subf %17, %20 : vector<8x8xf32>
    %22 = math.exp %21 : vector<8x8xf32>
    %cst_11 = arith.constant dense<0.000000e+00> : vector<8xf32>
    %23 = vector.multi_reduction <add>, %22, %cst_11 [1] : vector<8x8xf32> to vector<8xf32>
    %24 = vector.shape_cast %23 : vector<8xf32> to vector<8x1xf32>
    %cst_12 = arith.constant dense<0.000000e+00> : vector<8x8xf32>
    %25 = tpu.matmul %22, %16, %cst_12 {dimension_numbers = #tpu.dot_dimension_numbers<[1], [0], [0], [1], [0, 0, 1, 1], [], []>} : vector<8x8xf32>, vector<8x8xf32>, vector<8x8xf32> -> vector<8x8xf32>
    %26 = tpu.reciprocal %24 {approx = true} : vector<8x1xf32> -> vector<8x1xf32>
    %27 = vector.broadcast %26 : vector<8x1xf32> to vector<8x8xf32>
    %28 = arith.mulf %25, %27 : vector<8x8xf32>
    %c0_13 = arith.constant 0 : index
    %c0_14 = arith.constant 0 : index
    %29 = vector.load %arg18[%c0_13, %c0_14] : memref<8x32xf32, #tpu.memory_space<vmem>>, vector<8x8xf32>
    tpu.vector_store %arg18[%c0_13, %c0_14], %28 {strides = array<i32>} : memref<8x32xf32, #tpu.memory_space<vmem>>, vector<8x8xf32>,
    %30 = vector.extract_strided_slice %13 {offsets = [0, 8], sizes = [8, 8], strides = [1, 1]} : vector<8x32xf32> to vector<8x8xf32>
    %c0_15 = arith.constant 0 : index
    %c8 = arith.constant 8 : index
    %31 = vector.load %arg16[%c0_15, %c8] : memref<8x64xf32, #tpu.memory_space<vmem>>, vector<8x8xf32>
    %c0_16 = arith.constant 0 : index
    %c40 = arith.constant 40 : index
    %32 = vector.load %arg16[%c0_16, %c40] : memref<8x64xf32, #tpu.memory_space<vmem>>, vector<8x8xf32>
    %cst_17 = arith.constant dense<0.000000e+00> : vector<8x8xf32>
    %33 = tpu.matmul %30, %31, %cst_17 {dimension_numbers = #tpu.dot_dimension_numbers<[1], [1], [0], [0], [0, 0, 1, 0], [], []>} : vector<8x8xf32>, vector<8x8xf32>, vector<8x8xf32> -> vector<8x8xf32>
    %cst_18 = arith.constant dense<0xFF800000> : vector<8xf32>
    %34 = vector.multi_reduction <maximumf>, %33, %cst_18 [1] : vector<8x8xf32> to vector<8xf32>
    %35 = vector.shape_cast %34 : vector<8xf32> to vector<8x1xf32>
    %36 = vector.broadcast %35 : vector<8x1xf32> to vector<8x8xf32>
    %37 = arith.subf %33, %36 : vector<8x8xf32>
    %38 = math.exp %37 : vector<8x8xf32>
    %cst_19 = arith.constant dense<0.000000e+00> : vector<8xf32>
    %39 = vector.multi_reduction <add>, %38, %cst_19 [1] : vector<8x8xf32> to vector<8xf32>
    %40 = vector.shape_cast %39 : vector<8xf32> to vector<8x1xf32>
    %cst_20 = arith.constant dense<0.000000e+00> : vector<8x8xf32>
    %41 = tpu.matmul %38, %32, %cst_20 {dimension_numbers = #tpu.dot_dimension_numbers<[1], [0], [0], [1], [0, 0, 1, 1], [], []>} : vector<8x8xf32>, vector<8x8xf32>, vector<8x8xf32> -> vector<8x8xf32>
    %42 = tpu.reciprocal %40 {approx = true} : vector<8x1xf32> -> vector<8x1xf32>
    %43 = vector.broadcast %42 : vector<8x1xf32> to vector<8x8xf32>
    %44 = arith.mulf %41, %43 : vector<8x8xf32>
    %c0_21 = arith.constant 0 : index
    %c8_22 = arith.constant 8 : index
    %45 = vector.load %arg18[%c0_21, %c8_22] : memref<8x32xf32, #tpu.memory_space<vmem>>, vector<8x8xf32>
    tpu.vector_store %arg18[%c0_21, %c8_22], %44 {strides = array<i32>} : memref<8x32xf32, #tpu.memory_space<vmem>>, vector<8x8xf32>,
    %46 = vector.extract_strided_slice %13 {offsets = [0, 16], sizes = [8, 8], strides = [1, 1]} : vector<8x32xf32> to vector<8x8xf32>
    %c0_23 = arith.constant 0 : index
    %c16 = arith.constant 16 : index
    %47 = vector.load %arg16[%c0_23, %c16] : memref<8x64xf32, #tpu.memory_space<vmem>>, vector<8x8xf32>
    %c0_24 = arith.constant 0 : index
    %c48 = arith.constant 48 : index
    %48 = vector.load %arg16[%c0_24, %c48] : memref<8x64xf32, #tpu.memory_space<vmem>>, vector<8x8xf32>
    %cst_25 = arith.constant dense<0.000000e+00> : vector<8x8xf32>
    %49 = tpu.matmul %46, %47, %cst_25 {dimension_numbers = #tpu.dot_dimension_numbers<[1], [1], [0], [0], [0, 0, 1, 0], [], []>} : vector<8x8xf32>, vector<8x8xf32>, vector<8x8xf32> -> vector<8x8xf32>
    %cst_26 = arith.constant dense<0xFF800000> : vector<8xf32>
    %50 = vector.multi_reduction <maximumf>, %49, %cst_26 [1] : vector<8x8xf32> to vector<8xf32>
    %51 = vector.shape_cast %50 : vector<8xf32> to vector<8x1xf32>
    %52 = vector.broadcast %51 : vector<8x1xf32> to vector<8x8xf32>
    %53 = arith.subf %49, %52 : vector<8x8xf32>
    %54 = math.exp %53 : vector<8x8xf32>
    %cst_27 = arith.constant dense<0.000000e+00> : vector<8xf32>
    %55 = vector.multi_reduction <add>, %54, %cst_27 [1] : vector<8x8xf32> to vector<8xf32>
    %56 = vector.shape_cast %55 : vector<8xf32> to vector<8x1xf32>
    %cst_28 = arith.constant dense<0.000000e+00> : vector<8x8xf32>
    %57 = tpu.matmul %54, %48, %cst_28 {dimension_numbers = #tpu.dot_dimension_numbers<[1], [0], [0], [1], [0, 0, 1, 1], [], []>} : vector<8x8xf32>, vector<8x8xf32>, vector<8x8xf32> -> vector<8x8xf32>
    %58 = tpu.reciprocal %56 {approx = true} : vector<8x1xf32> -> vector<8x1xf32>
    %59 = vector.broadcast %58 : vector<8x1xf32> to vector<8x8xf32>
    %60 = arith.mulf %57, %59 : vector<8x8xf32>
    %c0_29 = arith.constant 0 : index
    %c16_30 = arith.constant 16 : index
    %61 = vector.load %arg18[%c0_29, %c16_30] : memref<8x32xf32, #tpu.memory_space<vmem>>, vector<8x8xf32>
    tpu.vector_store %arg18[%c0_29, %c16_30], %60 {strides = array<i32>} : memref<8x32xf32, #tpu.memory_space<vmem>>, vector<8x8xf32>,
    %62 = vector.extract_strided_slice %13 {offsets = [0, 24], sizes = [8, 8], strides = [1, 1]} : vector<8x32xf32> to vector<8x8xf32>
    %c0_31 = arith.constant 0 : index
    %c24 = arith.constant 24 : index
    %63 = vector.load %arg16[%c0_31, %c24] : memref<8x64xf32, #tpu.memory_space<vmem>>, vector<8x8xf32>
    %c0_32 = arith.constant 0 : index
    %c56 = arith.constant 56 : index
    %64 = vector.load %arg16[%c0_32, %c56] : memref<8x64xf32, #tpu.memory_space<vmem>>, vector<8x8xf32>
    %cst_33 = arith.constant dense<0.000000e+00> : vector<8x8xf32>
    %65 = tpu.matmul %62, %63, %cst_33 {dimension_numbers = #tpu.dot_dimension_numbers<[1], [1], [0], [0], [0, 0, 1, 0], [], []>} : vector<8x8xf32>, vector<8x8xf32>, vector<8x8xf32> -> vector<8x8xf32>
    %cst_34 = arith.constant dense<0xFF800000> : vector<8xf32>
    %66 = vector.multi_reduction <maximumf>, %65, %cst_34 [1] : vector<8x8xf32> to vector<8xf32>
    %67 = vector.shape_cast %66 : vector<8xf32> to vector<8x1xf32>
    %68 = vector.broadcast %67 : vector<8x1xf32> to vector<8x8xf32>
    %69 = arith.subf %65, %68 : vector<8x8xf32>
    %70 = math.exp %69 : vector<8x8xf32>
    %cst_35 = arith.constant dense<0.000000e+00> : vector<8xf32>
    %71 = vector.multi_reduction <add>, %70, %cst_35 [1] : vector<8x8xf32> to vector<8xf32>
    %72 = vector.shape_cast %71 : vector<8xf32> to vector<8x1xf32>
    %cst_36 = arith.constant dense<0.000000e+00> : vector<8x8xf32>
    %73 = tpu.matmul %70, %64, %cst_36 {dimension_numbers = #tpu.dot_dimension_numbers<[1], [0], [0], [1], [0, 0, 1, 1], [], []>} : vector<8x8xf32>, vector<8x8xf32>, vector<8x8xf32> -> vector<8x8xf32>
    %74 = tpu.reciprocal %72 {approx = true} : vector<8x1xf32> -> vector<8x1xf32>
    %75 = vector.broadcast %74 : vector<8x1xf32> to vector<8x8xf32>
    %76 = arith.mulf %73, %75 : vector<8x8xf32>
    %c0_37 = arith.constant 0 : index
    %c24_38 = arith.constant 24 : index
    %77 = vector.load %arg18[%c0_37, %c24_38] : memref<8x32xf32, #tpu.memory_space<vmem>>, vector<8x8xf32>
    tpu.vector_store %arg18[%c0_37, %c24_38], %76 {strides = array<i32>} : memref<8x32xf32, #tpu.memory_space<vmem>>, vector<8x8xf32>,
    %c0_39 = arith.constant 0 : index
    %c0_40 = arith.constant 0 : index
    %78 = vector.load %arg18[%c0_39, %c0_40] : memref<8x32xf32, #tpu.memory_space<vmem>>, vector<8x32xf32>
    %c0_41 = arith.constant 0 : index
    %c0_42 = arith.constant 0 : index
    %79 = vector.load %arg6[%c0_41, %c0_42] : memref<32x32xf32, #tpu.memory_space<vmem>>, vector<32x32xf32>
    %cst_43 = arith.constant dense<0.000000e+00> : vector<8x32xf32>
    %80 = tpu.matmul %78, %79, %cst_43 {dimension_numbers = #tpu.dot_dimension_numbers<[1], [0], [0], [1], [0, 0, 1, 1], [], []>} : vector<8x32xf32>, vector<32x32xf32>, vector<8x32xf32> -> vector<8x32xf32>
    %81 = vector.extract_strided_slice %0 {offsets = [1, 0], sizes = [1, 32], strides = [1, 1]} : vector<11x32xf32> to vector<1x32xf32>
    %82 = vector.broadcast %81 : vector<1x32xf32> to vector<8x32xf32>
    %83 = arith.addf %80, %82 : vector<8x32xf32>
    %84 = arith.addf %8, %83 : vector<8x32xf32>
    %85 = vector.extract_strided_slice %0 {offsets = [5, 0], sizes = [1, 32], strides = [1, 1]} : vector<11x32xf32> to vector<1x32xf32>
    %86 = vector.extract_strided_slice %0 {offsets = [6, 0], sizes = [1, 32], strides = [1, 1]} : vector<11x32xf32> to vector<1x32xf32>
    %cst_44 = arith.constant dense<0.000000e+00> : vector<8xf32>
    %87 = vector.multi_reduction <add>, %84, %cst_44 [1] : vector<8x32xf32> to vector<8xf32>
    %88 = vector.shape_cast %87 : vector<8xf32> to vector<8x1xf32>
    %cst_45 = arith.constant 3.200000e+01 : f32
    %89 = vector.broadcast %cst_45 : f32 to vector<8x1xf32>
    %90 = arith.divf %88, %89 : vector<8x1xf32>
    %91 = vector.broadcast %90 : vector<8x1xf32> to vector<8x32xf32>
    %92 = arith.subf %84, %91 : vector<8x32xf32>
    %93 = arith.mulf %92, %92 : vector<8x32xf32>
    %cst_46 = arith.constant dense<0.000000e+00> : vector<8xf32>
    %94 = vector.multi_reduction <add>, %93, %cst_46 [1] : vector<8x32xf32> to vector<8xf32>
    %95 = vector.shape_cast %94 : vector<8xf32> to vector<8x1xf32>
    %cst_47 = arith.constant 3.200000e+01 : f32
    %96 = vector.broadcast %cst_47 : f32 to vector<8x1xf32>
    %97 = arith.divf %95, %96 : vector<8x1xf32>
    %cst_48 = arith.constant 9.99999974E-6 : f32
    %98 = vector.broadcast %cst_48 : f32 to vector<8x1xf32>
    %99 = arith.addf %97, %98 : vector<8x1xf32>
    %100 = math.rsqrt %99 : vector<8x1xf32>
    %101 = vector.broadcast %100 : vector<8x1xf32> to vector<8x32xf32>
    %102 = arith.mulf %92, %101 : vector<8x32xf32>
    %103 = vector.broadcast %85 : vector<1x32xf32> to vector<8x32xf32>
    %104 = arith.mulf %102, %103 : vector<8x32xf32>
    %105 = vector.broadcast %86 : vector<1x32xf32> to vector<8x32xf32>
    %106 = arith.addf %104, %105 : vector<8x32xf32>
    %c0_49 = arith.constant 0 : index
    %c0_50 = arith.constant 0 : index
    %107 = vector.load %arg7[%c0_49, %c0_50] : memref<32x32xf32, #tpu.memory_space<vmem>>, vector<32x32xf32>
    %cst_51 = arith.constant dense<0.000000e+00> : vector<8x32xf32>
    %108 = tpu.matmul %106, %107, %cst_51 {dimension_numbers = #tpu.dot_dimension_numbers<[1], [0], [0], [1], [0, 0, 1, 1], [], []>} : vector<8x32xf32>, vector<32x32xf32>, vector<8x32xf32> -> vector<8x32xf32>
    %109 = vector.extract_strided_slice %0 {offsets = [2, 0], sizes = [1, 32], strides = [1, 1]} : vector<11x32xf32> to vector<1x32xf32>
    %110 = vector.broadcast %109 : vector<1x32xf32> to vector<8x32xf32>
    %111 = arith.addf %108, %110 : vector<8x32xf32>
    %112 = vector.extract_strided_slice %111 {offsets = [0, 0], sizes = [8, 8], strides = [1, 1]} : vector<8x32xf32> to vector<8x8xf32>
    %c0_52 = arith.constant 0 : index
    %c0_53 = arith.constant 0 : index
    %113 = vector.load %arg17[%c0_52, %c0_53] : memref<8x64xf32, #tpu.memory_space<vmem>>, vector<8x8xf32>
    %c0_54 = arith.constant 0 : index
    %c32_55 = arith.constant 32 : index
    %114 = vector.load %arg17[%c0_54, %c32_55] : memref<8x64xf32, #tpu.memory_space<vmem>>, vector<8x8xf32>
    %cst_56 = arith.constant dense<0.000000e+00> : vector<8x8xf32>
    %115 = tpu.matmul %112, %113, %cst_56 {dimension_numbers = #tpu.dot_dimension_numbers<[1], [1], [0], [0], [0, 0, 1, 0], [], []>} : vector<8x8xf32>, vector<8x8xf32>, vector<8x8xf32> -> vector<8x8xf32>
    %cst_57 = arith.constant dense<0xFF800000> : vector<8xf32>
    %116 = vector.multi_reduction <maximumf>, %115, %cst_57 [1] : vector<8x8xf32> to vector<8xf32>
    %117 = vector.shape_cast %116 : vector<8xf32> to vector<8x1xf32>
    %118 = vector.broadcast %117 : vector<8x1xf32> to vector<8x8xf32>
    %119 = arith.subf %115, %118 : vector<8x8xf32>
    %120 = math.exp %119 : vector<8x8xf32>
    %cst_58 = arith.constant dense<0.000000e+00> : vector<8xf32>
    %121 = vector.multi_reduction <add>, %120, %cst_58 [1] : vector<8x8xf32> to vector<8xf32>
    %122 = vector.shape_cast %121 : vector<8xf32> to vector<8x1xf32>
    %cst_59 = arith.constant dense<0.000000e+00> : vector<8x8xf32>
    %123 = tpu.matmul %120, %114, %cst_59 {dimension_numbers = #tpu.dot_dimension_numbers<[1], [0], [0], [1], [0, 0, 1, 1], [], []>} : vector<8x8xf32>, vector<8x8xf32>, vector<8x8xf32> -> vector<8x8xf32>
    %124 = tpu.reciprocal %122 {approx = true} : vector<8x1xf32> -> vector<8x1xf32>
    %125 = vector.broadcast %124 : vector<8x1xf32> to vector<8x8xf32>
    %126 = arith.mulf %123, %125 : vector<8x8xf32>
    %c0_60 = arith.constant 0 : index
    %c0_61 = arith.constant 0 : index
    %127 = vector.load %arg18[%c0_60, %c0_61] : memref<8x32xf32, #tpu.memory_space<vmem>>, vector<8x8xf32>
    tpu.vector_store %arg18[%c0_60, %c0_61], %126 {strides = array<i32>} : memref<8x32xf32, #tpu.memory_space<vmem>>, vector<8x8xf32>,
    %128 = vector.extract_strided_slice %111 {offsets = [0, 8], sizes = [8, 8], strides = [1, 1]} : vector<8x32xf32> to vector<8x8xf32>
    %c0_62 = arith.constant 0 : index
    %c8_63 = arith.constant 8 : index
    %129 = vector.load %arg17[%c0_62, %c8_63] : memref<8x64xf32, #tpu.memory_space<vmem>>, vector<8x8xf32>
    %c0_64 = arith.constant 0 : index
    %c40_65 = arith.constant 40 : index
    %130 = vector.load %arg17[%c0_64, %c40_65] : memref<8x64xf32, #tpu.memory_space<vmem>>, vector<8x8xf32>
    %cst_66 = arith.constant dense<0.000000e+00> : vector<8x8xf32>
    %131 = tpu.matmul %128, %129, %cst_66 {dimension_numbers = #tpu.dot_dimension_numbers<[1], [1], [0], [0], [0, 0, 1, 0], [], []>} : vector<8x8xf32>, vector<8x8xf32>, vector<8x8xf32> -> vector<8x8xf32>
    %cst_67 = arith.constant dense<0xFF800000> : vector<8xf32>
    %132 = vector.multi_reduction <maximumf>, %131, %cst_67 [1] : vector<8x8xf32> to vector<8xf32>
    %133 = vector.shape_cast %132 : vector<8xf32> to vector<8x1xf32>
    %134 = vector.broadcast %133 : vector<8x1xf32> to vector<8x8xf32>
    %135 = arith.subf %131, %134 : vector<8x8xf32>
    %136 = math.exp %135 : vector<8x8xf32>
    %cst_68 = arith.constant dense<0.000000e+00> : vector<8xf32>
    %137 = vector.multi_reduction <add>, %136, %cst_68 [1] : vector<8x8xf32> to vector<8xf32>
    %138 = vector.shape_cast %137 : vector<8xf32> to vector<8x1xf32>
    %cst_69 = arith.constant dense<0.000000e+00> : vector<8x8xf32>
    %139 = tpu.matmul %136, %130, %cst_69 {dimension_numbers = #tpu.dot_dimension_numbers<[1], [0], [0], [1], [0, 0, 1, 1], [], []>} : vector<8x8xf32>, vector<8x8xf32>, vector<8x8xf32> -> vector<8x8xf32>
    %140 = tpu.reciprocal %138 {approx = true} : vector<8x1xf32> -> vector<8x1xf32>
    %141 = vector.broadcast %140 : vector<8x1xf32> to vector<8x8xf32>
    %142 = arith.mulf %139, %141 : vector<8x8xf32>
    %c0_70 = arith.constant 0 : index
    %c8_71 = arith.constant 8 : index
    %143 = vector.load %arg18[%c0_70, %c8_71] : memref<8x32xf32, #tpu.memory_space<vmem>>, vector<8x8xf32>
    tpu.vector_store %arg18[%c0_70, %c8_71], %142 {strides = array<i32>} : memref<8x32xf32, #tpu.memory_space<vmem>>, vector<8x8xf32>,
    %144 = vector.extract_strided_slice %111 {offsets = [0, 16], sizes = [8, 8], strides = [1, 1]} : vector<8x32xf32> to vector<8x8xf32>
    %c0_72 = arith.constant 0 : index
    %c16_73 = arith.constant 16 : index
    %145 = vector.load %arg17[%c0_72, %c16_73] : memref<8x64xf32, #tpu.memory_space<vmem>>, vector<8x8xf32>
    %c0_74 = arith.constant 0 : index
    %c48_75 = arith.constant 48 : index
    %146 = vector.load %arg17[%c0_74, %c48_75] : memref<8x64xf32, #tpu.memory_space<vmem>>, vector<8x8xf32>
    %cst_76 = arith.constant dense<0.000000e+00> : vector<8x8xf32>
    %147 = tpu.matmul %144, %145, %cst_76 {dimension_numbers = #tpu.dot_dimension_numbers<[1], [1], [0], [0], [0, 0, 1, 0], [], []>} : vector<8x8xf32>, vector<8x8xf32>, vector<8x8xf32> -> vector<8x8xf32>
    %cst_77 = arith.constant dense<0xFF800000> : vector<8xf32>
    %148 = vector.multi_reduction <maximumf>, %147, %cst_77 [1] : vector<8x8xf32> to vector<8xf32>
    %149 = vector.shape_cast %148 : vector<8xf32> to vector<8x1xf32>
    %150 = vector.broadcast %149 : vector<8x1xf32> to vector<8x8xf32>
    %151 = arith.subf %147, %150 : vector<8x8xf32>
    %152 = math.exp %151 : vector<8x8xf32>
    %cst_78 = arith.constant dense<0.000000e+00> : vector<8xf32>
    %153 = vector.multi_reduction <add>, %152, %cst_78 [1] : vector<8x8xf32> to vector<8xf32>
    %154 = vector.shape_cast %153 : vector<8xf32> to vector<8x1xf32>
    %cst_79 = arith.constant dense<0.000000e+00> : vector<8x8xf32>
    %155 = tpu.matmul %152, %146, %cst_79 {dimension_numbers = #tpu.dot_dimension_numbers<[1], [0], [0], [1], [0, 0, 1, 1], [], []>} : vector<8x8xf32>, vector<8x8xf32>, vector<8x8xf32> -> vector<8x8xf32>
    %156 = tpu.reciprocal %154 {approx = true} : vector<8x1xf32> -> vector<8x1xf32>
    %157 = vector.broadcast %156 : vector<8x1xf32> to vector<8x8xf32>
    %158 = arith.mulf %155, %157 : vector<8x8xf32>
    %c0_80 = arith.constant 0 : index
    %c16_81 = arith.constant 16 : index
    %159 = vector.load %arg18[%c0_80, %c16_81] : memref<8x32xf32, #tpu.memory_space<vmem>>, vector<8x8xf32>
    tpu.vector_store %arg18[%c0_80, %c16_81], %158 {strides = array<i32>} : memref<8x32xf32, #tpu.memory_space<vmem>>, vector<8x8xf32>,
    %160 = vector.extract_strided_slice %111 {offsets = [0, 24], sizes = [8, 8], strides = [1, 1]} : vector<8x32xf32> to vector<8x8xf32>
    %c0_82 = arith.constant 0 : index
    %c24_83 = arith.constant 24 : index
    %161 = vector.load %arg17[%c0_82, %c24_83] : memref<8x64xf32, #tpu.memory_space<vmem>>, vector<8x8xf32>
    %c0_84 = arith.constant 0 : index
    %c56_85 = arith.constant 56 : index
    %162 = vector.load %arg17[%c0_84, %c56_85] : memref<8x64xf32, #tpu.memory_space<vmem>>, vector<8x8xf32>
    %cst_86 = arith.constant dense<0.000000e+00> : vector<8x8xf32>
    %163 = tpu.matmul %160, %161, %cst_86 {dimension_numbers = #tpu.dot_dimension_numbers<[1], [1], [0], [0], [0, 0, 1, 0], [], []>} : vector<8x8xf32>, vector<8x8xf32>, vector<8x8xf32> -> vector<8x8xf32>
    %cst_87 = arith.constant dense<0xFF800000> : vector<8xf32>
    %164 = vector.multi_reduction <maximumf>, %163, %cst_87 [1] : vector<8x8xf32> to vector<8xf32>
    %165 = vector.shape_cast %164 : vector<8xf32> to vector<8x1xf32>
    %166 = vector.broadcast %165 : vector<8x1xf32> to vector<8x8xf32>
    %167 = arith.subf %163, %166 : vector<8x8xf32>
    %168 = math.exp %167 : vector<8x8xf32>
    %cst_88 = arith.constant dense<0.000000e+00> : vector<8xf32>
    %169 = vector.multi_reduction <add>, %168, %cst_88 [1] : vector<8x8xf32> to vector<8xf32>
    %170 = vector.shape_cast %169 : vector<8xf32> to vector<8x1xf32>
    %cst_89 = arith.constant dense<0.000000e+00> : vector<8x8xf32>
    %171 = tpu.matmul %168, %162, %cst_89 {dimension_numbers = #tpu.dot_dimension_numbers<[1], [0], [0], [1], [0, 0, 1, 1], [], []>} : vector<8x8xf32>, vector<8x8xf32>, vector<8x8xf32> -> vector<8x8xf32>
    %172 = tpu.reciprocal %170 {approx = true} : vector<8x1xf32> -> vector<8x1xf32>
    %173 = vector.broadcast %172 : vector<8x1xf32> to vector<8x8xf32>
    %174 = arith.mulf %171, %173 : vector<8x8xf32>
    %c0_90 = arith.constant 0 : index
    %c24_91 = arith.constant 24 : index
    %175 = vector.load %arg18[%c0_90, %c24_91] : memref<8x32xf32, #tpu.memory_space<vmem>>, vector<8x8xf32>
    tpu.vector_store %arg18[%c0_90, %c24_91], %174 {strides = array<i32>} : memref<8x32xf32, #tpu.memory_space<vmem>>, vector<8x8xf32>,
    %c0_92 = arith.constant 0 : index
    %c0_93 = arith.constant 0 : index
    %176 = vector.load %arg18[%c0_92, %c0_93] : memref<8x32xf32, #tpu.memory_space<vmem>>, vector<8x32xf32>
    %c0_94 = arith.constant 0 : index
    %c0_95 = arith.constant 0 : index
    %177 = vector.load %arg9[%c0_94, %c0_95] : memref<32x32xf32, #tpu.memory_space<vmem>>, vector<32x32xf32>
    %cst_96 = arith.constant dense<0.000000e+00> : vector<8x32xf32>
    %178 = tpu.matmul %176, %177, %cst_96 {dimension_numbers = #tpu.dot_dimension_numbers<[1], [0], [0], [1], [0, 0, 1, 1], [], []>} : vector<8x32xf32>, vector<32x32xf32>, vector<8x32xf32> -> vector<8x32xf32>
    %179 = vector.extract_strided_slice %0 {offsets = [3, 0], sizes = [1, 32], strides = [1, 1]} : vector<11x32xf32> to vector<1x32xf32>
    %180 = vector.broadcast %179 : vector<1x32xf32> to vector<8x32xf32>
    %181 = arith.addf %178, %180 : vector<8x32xf32>
    %182 = arith.addf %106, %181 : vector<8x32xf32>
    %183 = vector.extract_strided_slice %0 {offsets = [7, 0], sizes = [1, 32], strides = [1, 1]} : vector<11x32xf32> to vector<1x32xf32>
    %184 = vector.extract_strided_slice %0 {offsets = [8, 0], sizes = [1, 32], strides = [1, 1]} : vector<11x32xf32> to vector<1x32xf32>
    %cst_97 = arith.constant dense<0.000000e+00> : vector<8xf32>
    %185 = vector.multi_reduction <add>, %182, %cst_97 [1] : vector<8x32xf32> to vector<8xf32>
    %186 = vector.shape_cast %185 : vector<8xf32> to vector<8x1xf32>
    %cst_98 = arith.constant 3.200000e+01 : f32
    %187 = vector.broadcast %cst_98 : f32 to vector<8x1xf32>
    %188 = arith.divf %186, %187 : vector<8x1xf32>
    %189 = vector.broadcast %188 : vector<8x1xf32> to vector<8x32xf32>
    %190 = arith.subf %182, %189 : vector<8x32xf32>
    %191 = arith.mulf %190, %190 : vector<8x32xf32>
    %cst_99 = arith.constant dense<0.000000e+00> : vector<8xf32>
    %192 = vector.multi_reduction <add>, %191, %cst_99 [1] : vector<8x32xf32> to vector<8xf32>
    %193 = vector.shape_cast %192 : vector<8xf32> to vector<8x1xf32>
    %cst_100 = arith.constant 3.200000e+01 : f32
    %194 = vector.broadcast %cst_100 : f32 to vector<8x1xf32>
    %195 = arith.divf %193, %194 : vector<8x1xf32>
    %cst_101 = arith.constant 9.99999974E-6 : f32
    %196 = vector.broadcast %cst_101 : f32 to vector<8x1xf32>
    %197 = arith.addf %195, %196 : vector<8x1xf32>
    %198 = math.rsqrt %197 : vector<8x1xf32>
    %199 = vector.broadcast %198 : vector<8x1xf32> to vector<8x32xf32>
    %200 = arith.mulf %190, %199 : vector<8x32xf32>
    %201 = vector.broadcast %183 : vector<1x32xf32> to vector<8x32xf32>
    %202 = arith.mulf %200, %201 : vector<8x32xf32>
    %203 = vector.broadcast %184 : vector<1x32xf32> to vector<8x32xf32>
    %204 = arith.addf %202, %203 : vector<8x32xf32>
    %c0_102 = arith.constant 0 : index
    %c0_103 = arith.constant 0 : index
    %205 = vector.load %arg10[%c0_102, %c0_103] : memref<32x64xf32, #tpu.memory_space<vmem>>, vector<32x64xf32>
    %cst_104 = arith.constant dense<0.000000e+00> : vector<8x64xf32>
    %206 = tpu.matmul %204, %205, %cst_104 {dimension_numbers = #tpu.dot_dimension_numbers<[1], [0], [0], [1], [0, 0, 1, 1], [], []>} : vector<8x32xf32>, vector<32x64xf32>, vector<8x64xf32> -> vector<8x64xf32>
    %c0_105 = arith.constant 0 : index
    %c0_106 = arith.constant 0 : index
    %207 = vector.load %arg14[%c0_105, %c0_106] : memref<1x64xf32, #tpu.memory_space<vmem>>, vector<1x64xf32>
    %208 = vector.broadcast %207 : vector<1x64xf32> to vector<8x64xf32>
    %209 = arith.addf %206, %208 : vector<8x64xf32>
    %cst_107 = arith.constant 0.000000e+00 : f32
    %210 = vector.broadcast %cst_107 : f32 to vector<8x64xf32>
    %211 = arith.maximumf %209, %210 : vector<8x64xf32>
    %c0_108 = arith.constant 0 : index
    %c0_109 = arith.constant 0 : index
    %212 = vector.load %arg11[%c0_108, %c0_109] : memref<64x32xf32, #tpu.memory_space<vmem>>, vector<64x32xf32>
    %cst_110 = arith.constant dense<0.000000e+00> : vector<8x32xf32>
    %213 = tpu.matmul %211, %212, %cst_110 {dimension_numbers = #tpu.dot_dimension_numbers<[1], [0], [0], [1], [0, 0, 1, 1], [], []>} : vector<8x64xf32>, vector<64x32xf32>, vector<8x32xf32> -> vector<8x32xf32>
    %214 = vector.extract_strided_slice %0 {offsets = [4, 0], sizes = [1, 32], strides = [1, 1]} : vector<11x32xf32> to vector<1x32xf32>
    %215 = vector.broadcast %214 : vector<1x32xf32> to vector<8x32xf32>
    %216 = arith.addf %213, %215 : vector<8x32xf32>
    %217 = arith.addf %204, %216 : vector<8x32xf32>
    %218 = vector.extract_strided_slice %0 {offsets = [9, 0], sizes = [1, 32], strides = [1, 1]} : vector<11x32xf32> to vector<1x32xf32>
    %219 = vector.extract_strided_slice %0 {offsets = [10, 0], sizes = [1, 32], strides = [1, 1]} : vector<11x32xf32> to vector<1x32xf32>
    %cst_111 = arith.constant dense<0.000000e+00> : vector<8xf32>
    %220 = vector.multi_reduction <add>, %217, %cst_111 [1] : vector<8x32xf32> to vector<8xf32>
    %221 = vector.shape_cast %220 : vector<8xf32> to vector<8x1xf32>
    %cst_112 = arith.constant 3.200000e+01 : f32
    %222 = vector.broadcast %cst_112 : f32 to vector<8x1xf32>
    %223 = arith.divf %221, %222 : vector<8x1xf32>
    %224 = vector.broadcast %223 : vector<8x1xf32> to vector<8x32xf32>
    %225 = arith.subf %217, %224 : vector<8x32xf32>
    %226 = arith.mulf %225, %225 : vector<8x32xf32>
    %cst_113 = arith.constant dense<0.000000e+00> : vector<8xf32>
    %227 = vector.multi_reduction <add>, %226, %cst_113 [1] : vector<8x32xf32> to vector<8xf32>
    %228 = vector.shape_cast %227 : vector<8xf32> to vector<8x1xf32>
    %cst_114 = arith.constant 3.200000e+01 : f32
    %229 = vector.broadcast %cst_114 : f32 to vector<8x1xf32>
    %230 = arith.divf %228, %229 : vector<8x1xf32>
    %cst_115 = arith.constant 9.99999974E-6 : f32
    %231 = vector.broadcast %cst_115 : f32 to vector<8x1xf32>
    %232 = arith.addf %230, %231 : vector<8x1xf32>
    %233 = math.rsqrt %232 : vector<8x1xf32>
    %234 = vector.broadcast %233 : vector<8x1xf32> to vector<8x32xf32>
    %235 = arith.mulf %225, %234 : vector<8x32xf32>
    %236 = vector.broadcast %218 : vector<1x32xf32> to vector<8x32xf32>
    %237 = arith.mulf %235, %236 : vector<8x32xf32>
    %238 = vector.broadcast %219 : vector<1x32xf32> to vector<8x32xf32>
    %239 = arith.addf %237, %238 : vector<8x32xf32>
    %c0_116 = arith.constant 0 : index
    %c0_117 = arith.constant 0 : index
    %c0_118 = arith.constant 0 : index
    %240 = vector.load %arg15[%c0_116, %c0_117, %c0_118] : memref<1x8x32xf32, #tpu.memory_space<vmem>>, vector<1x8x32xf32>
    %241 = vector.shape_cast %240 : vector<1x8x32xf32> to vector<8x32xf32>
    %242 = vector.shape_cast %239 : vector<8x32xf32> to vector<1x8x32xf32>
    tpu.vector_store %arg15[%c0_116, %c0_117, %c0_118], %242 {strides = array<i32>} : memref<1x8x32xf32, #tpu.memory_space<vmem>>, vector<1x8x32xf32>,
    return
  }
  func.func @transform_0(%arg0: i32, %arg1: i32) -> (i32, i32, i32) {
    %c0_i32 = arith.constant 0 : i32
    %c0_i32_0 = arith.constant 0 : i32
    %c0_i32_1 = arith.constant 0 : i32
    return %arg0, %c0_i32, %c0_i32_0 : i32, i32, i32
  }
  func.func @transform_1(%arg0: i32, %arg1: i32) -> (i32, i32, i32) {
    %c0_i32 = arith.constant 0 : i32
    %c0_i32_0 = arith.constant 0 : i32
    %c0_i32_1 = arith.constant 0 : i32
    return %arg0, %c0_i32, %c0_i32_0 : i32, i32, i32
  }
  func.func @transform_2(%arg0: i32, %arg1: i32) -> (i32, i32) {
    %c0_i32 = arith.constant 0 : i32
    %c0_i32_0 = arith.constant 0 : i32
    %c0_i32_1 = arith.constant 0 : i32
    return %c0_i32, %c0_i32_0 : i32, i32
  }
  func.func @transform_3(%arg0: i32, %arg1: i32) -> (i32, i32) {
    %c0_i32 = arith.constant 0 : i32
    %c0_i32_0 = arith.constant 0 : i32
    %c0_i32_1 = arith.constant 0 : i32
    return %c0_i32, %c0_i32_0 : i32, i32
  }
  func.func @transform_4(%arg0: i32, %arg1: i32) -> (i32, i32) {
    %c0_i32 = arith.constant 0 : i32
    %c0_i32_0 = arith.constant 0 : i32
    %c0_i32_1 = arith.constant 0 : i32
    return %c0_i32, %c0_i32_0 : i32, i32
  }
  func.func @transform_5(%arg0: i32, %arg1: i32) -> (i32, i32) {
    %c0_i32 = arith.constant 0 : i32
    %c0_i32_0 = arith.constant 0 : i32
    %c0_i32_1 = arith.constant 0 : i32
    return %c0_i32, %c0_i32_0 : i32, i32
  }
  func.func @transform_6(%arg0: i32, %arg1: i32) -> (i32, i32) {
    %c0_i32 = arith.constant 0 : i32
    %c0_i32_0 = arith.constant 0 : i32
    %c0_i32_1 = arith.constant 0 : i32
    return %c0_i32, %c0_i32_0 : i32, i32
  }
  func.func @transform_7(%arg0: i32, %arg1: i32) -> (i32, i32) {
    %c0_i32 = arith.constant 0 : i32
    %c0_i32_0 = arith.constant 0 : i32
    %c0_i32_1 = arith.constant 0 : i32
    return %c0_i32, %c0_i32_0 : i32, i32
  }
  func.func @transform_8(%arg0: i32, %arg1: i32) -> (i32, i32) {
    %c0_i32 = arith.constant 0 : i32
    %c0_i32_0 = arith.constant 0 : i32
    %c0_i32_1 = arith.constant 0 : i32
    return %c0_i32, %c0_i32_0 : i32, i32
  }
  func.func @transform_9(%arg0: i32, %arg1: i32) -> (i32, i32) {
    %c0_i32 = arith.constant 0 : i32
    %c0_i32_0 = arith.constant 0 : i32
    %c0_i32_1 = arith.constant 0 : i32
    return %c0_i32, %c0_i32_0 : i32, i32
  }
  func.func @transform_10(%arg0: i32, %arg1: i32) -> (i32, i32) {
    %c0_i32 = arith.constant 0 : i32
    %c0_i32_0 = arith.constant 0 : i32
    %c0_i32_1 = arith.constant 0 : i32
    return %c0_i32, %c0_i32_0 : i32, i32
  }
  func.func @transform_11(%arg0: i32, %arg1: i32) -> (i32, i32) {
    %c0_i32 = arith.constant 0 : i32
    %c0_i32_0 = arith.constant 0 : i32
    %c0_i32_1 = arith.constant 0 : i32
    return %c0_i32, %c0_i32_0 : i32, i32
  }
  func.func @transform_12(%arg0: i32, %arg1: i32) -> (i32, i32) {
    %c0_i32 = arith.constant 0 : i32
    %c0_i32_0 = arith.constant 0 : i32
    %c0_i32_1 = arith.constant 0 : i32
    return %c0_i32, %c0_i32_0 : i32, i32
  }
  func.func @transform_13(%arg0: i32, %arg1: i32) -> (i32, i32, i32) {
    %c0_i32 = arith.constant 0 : i32
    %c0_i32_0 = arith.constant 0 : i32
    return %arg0, %arg1, %c0_i32 : i32, i32, i32
  }
}

</mosaic_0001>

<bundles_post_ra>
// kernel: tpu_custom_call.1
= control target key start
LH: loop header
LB: loop body
LE: loop exit
PB: predicated region body
PF: predicated region fallthrough
CT: control target
= control target key end

     0   :  { %s4465_s0 = inlined_call_operand.hbm [shape: f32[2,8,32], index: 0, kind: input, shape index: {}]   ;;  %s4466_s1 = inlined_call_operand.hbm [shape: f32[2,8,32], index: 1, kind: input, shape index: {}]   ;;  %s4467_s2 = inlined_call_operand.vmem [shape: f32[32,32], index: 2, kind: input, shape index: {}]   ;;  %s4468_s3 = inlined_call_operand.vmem [shape: f32[32,64], index: 3, kind: input, shape index: {}]   ;;  %s4469_s4 = inlined_call_operand.vmem [shape: f32[32,32], index: 4, kind: input, shape index: {}]   ;;  %s4470_s5 = inlined_call_operand.hbm [shape: f32[32,32], index: 5, kind: input, shape index: {}]   ;;  %s4471_s6 = inlined_call_operand.hbm [shape: f32[32,64], index: 6, kind: input, shape index: {}]   ;;  %s4472_s7 = inlined_call_operand.hbm [shape: f32[32,32], index: 7, kind: input, shape index: {}]   ;;  %s4473_s8 = inlined_call_operand.hbm [shape: f32[32,64], index: 8, kind: input, shape index: {}]   ;;  %s4474_s9 = inlined_call_operand.vmem [shape: f32[64,32], index: 9, kind: input, shape index: {}]   ;;  %s4475_s10 = inlined_call_operand.vmem [shape: f32[2,64], index: 10, kind: input, shape index: {}]   ;;  %s4476_s11 = inlined_call_operand.hbm [shape: f32[11,32], index: 11, kind: input, shape index: {}]   ;;  %s4477_s12 = inlined_call_operand.vmem [shape: f32[1,64], index: 12, kind: input, shape index: {}]   ;;  %s4478_s13 = inlined_call_operand.hbm [shape: f32[2,8,32], index: 13, kind: output, shape index: {}]  }
   0x1   :  { %4487 = sst [smem:[#allocation25_spill]] %s4467_s2 }
   0x2   :  { %4488 = sst [smem:[#allocation26_spill]] %s4469_s4 }
   0x3   :  { %4489 = sst [smem:[#allocation27_spill]] %s4470_s5 }
   0x4   :  { %4490 = sst [smem:[#allocation28_spill]] %s4471_s6 }
   0x5   :  { %4491 = sst [smem:[#allocation29_spill]] %s4472_s7 }
   0x6   :  { %4492 = sst [smem:[#allocation30_spill]] %s4473_s8 }
   0x7   :  { %4493 = sst [smem:[#allocation31_spill]] %s4474_s9 }
   0x8   :  { %4494 = sst [smem:[#allocation32_spill]] %s4475_s10 }
   0x9   :  { %4495 = sst [smem:[#allocation33_spill]] %s4476_s11 }
   0xa   :  { %4496 = sst [smem:[#allocation34_spill]] %s4477_s12 }
   0xb   :  { %4497 = sst [smem:[#allocation35_spill]] %s4478_s13 }
   0xc   :  { %18 = vsyncpa [#allocation6], 0 }
   0xd   :  { %20 = vsyncpa [#allocation6 + $0x1], 0 }
   0xe   :  { %21 = vsyncpa [#allocation9], 0 }
   0xf   :  { %23 = vsyncpa [#allocation9 + $0x1], 0 }
  0x10   :  { %24 = vsyncpa [#allocation12], 0 }
  0x11   :  { %25 = vsyncpa [#allocation15], 0 }
  0x12   :  { %26 = vsyncpa [#allocation7], 0 }
  0x13   :  { %28 = vsyncpa [#allocation7 + $0x1], 0  ;;  %s3790_s25 = smov 0   ;;  %s3792_s26 = smov 0  }
  0x14   :  { %s3794_s27 = smov 0   ;;  %s3796_s28 = smov 0  }
  0x15   :  { %s3798_s29 = smov 0   ;;  %s3800_s30 = smov 0  }
  0x16 LB: > { %4498 = sst [smem:[#allocation24_spill]] %s3687_s28  ;;  %s3821_s14 = sadd.s32 4294967295, %s3695_s30   ;;  %s3695_s30 = sphi %s3800_s30, %s34_s30   ;;  %s3691_s29 = sphi %s3798_s29, %s4535_s29   ;;  %s3687_s28 = sphi %s3796_s28, %s4534_s28   ;;  %s3683_s27 = sphi %s3794_s27, %s4533_s27   ;;  %s3679_s26 = sphi %s3792_s26, %s4532_s26   ;;  %s3675_s25 = sphi %s3790_s25, %s4531_s25  }
  0x17   : > { %p2863_p0 = scmp.ge.s32.totalorder %s3695_s30, 1  ;;  %p4483_p1 = scmp.eq.s32.totalorder %s3821_s14, 0 }
  0x18   : > { %p362_p2 = scmp.lt.s32.totalorder %s3695_s30, 3  ;;  %s3697_s16 = smov [#allocation10]  }
  0x19   : > { %s383_s17 = sshll.u32 %s3697_s16, 4  ;;  %s3698_s19 = smov [#allocation11]   ;;  %s3830_s17 = int_to_ptr.vmem [resolvable:$true] %s383_s17 }
  0x1a   : > { %p3826_p3 = pnand %p2863_p0, %p362_p2  ;;  %s396_s20 = sshll.u32 %s3698_s19, 4  ;;  %s3841_s20 = int_to_ptr.vmem [resolvable:$true] %s396_s20 }
  0x1b   : > { %s3699_s21 = smov [#allocation14]   ;;  %s4501_s5 = sld [smem:[#allocation27_spill]] }
  0x1c   : > { %s4499_s15 = scalar_select %p3826_p3, 1, 0 }
  0x1d   : > { %p3252_p4 = pneg %p3826_p3  ;;  %s3843_s22 = sshll.u32 %s3699_s21, 4  ;;  %s423_s22 = int_to_ptr.vmem [resolvable:$true] %s3843_s22 }
  0x1f   : > { %p3837_p6 = pnand %p3252_p4, %p4483_p1 }
  0x21   : > { %s3397_s16 = scalar_lea.hbm %s4501_s5, 512  ;;  %p3853_p8 = pneg %p3837_p6 }
  0x22   : > { %p3398_p7 = scmp.ne.s32.totalorder %s4501_s5, %s3397_s16  ;;  %p3404_p11 = scmp.lt.u32.totalorder %s3397_s16, %s4501_s5 }
  0x24   : > { %p3400_p9 = pnand %p3853_p8, %p3398_p7 }
  0x26   : > { %p3401_p10 = pneg %p3400_p9 }
  0x28   : > { %p3406_p12 = pnand %p3404_p11, %p3401_p10 }
  0x2a   : > { %3409 = shalt.err (!%p3406_p12)
}
  0x2b   : > { %s3410_s13 = scalar_lea.vmem %s3830_s17, 512  ;;  %p3418_p4 = scmp.lt.s32.totalorder %s3830_s17, %s3830_s17 }
  0x2c   : > { %p3411_p13 = scmp.ne.s32.totalorder %s3830_s17, %s3410_s13  ;;  %p3419_p5 = scmp.lt.s32.totalorder %s3410_s13, %s3410_s13 }
  0x2e   : > { %p3413_p0 = pnand %p3411_p13, %p3853_p8  ;;  %p3420_p7 = por %p3419_p5, %p3418_p4 }
  0x30   : > { %p3414_p2 = pneg %p3413_p0 }
  0x32   : > { %p3421_p9 = pnand %p3420_p7, %p3414_p2 }
  0x34   : > { %3424 = shalt.err (!%p3421_p9)
}
  0x35   : > { %s3700_s28 = smov 128   ;;  %s3701_s23 = smov 8  }
  0x36   : > { %3255 = dma.hbm_to_vmem [thread:$0]  (!%p3837_p6), %s4501_s5, 512, %s3830_s17, [#allocation9], %s3700_s28, %s3700_s28, %s3701_s23  }
  0x37   : > { %s4503_s6 = sld [smem:[#allocation28_spill]] }
  0x3d   : > { %s3425_s13 = scalar_lea.hbm %s4503_s6, 512 }
  0x3e   : > { %p3426_p5 = scmp.ne.s32.totalorder %s4503_s6, %s3425_s13  ;;  %p3432_p12 = scmp.lt.u32.totalorder %s3425_s13, %s4503_s6 }
  0x40   : > { %p3428_p10 = pnand %p3426_p5, %p3853_p8 }
  0x42   : > { %p3429_p11 = pneg %p3428_p10 }
  0x44   : > { %p3434_p13 = pnand %p3432_p12, %p3429_p11 }
  0x46   : > { %3437 = shalt.err (!%p3434_p13)
}
  0x47   : > { %s3438_s17 = scalar_lea.vmem %s3841_s20, 512  ;;  %p3446_p7 = scmp.lt.s32.totalorder %s3841_s20, %s3841_s20 }
  0x48   : > { %p3439_p0 = scmp.ne.s32.totalorder %s3841_s20, %s3438_s17  ;;  %p3447_p9 = scmp.lt.s32.totalorder %s3438_s17, %s3438_s17 }
  0x4a   : > { %p3441_p2 = pnand %p3439_p0, %p3853_p8  ;;  %p3448_p5 = por %p3447_p9, %p3446_p7 }
  0x4c   : > { %p3442_p4 = pneg %p3441_p2 }
  0x4e   : > { %p3449_p10 = pnand %p3448_p5, %p3442_p4 }
  0x50   : > { %3452 = shalt.err (!%p3449_p10)
}
  0x51   : > { %3258 = dma.hbm_to_vmem [thread:$0]  (!%p3837_p6), %s4503_s6, 512, %s3841_s20, [#allocation12], %s3700_s28, %s3700_s28, %s3701_s23  }
  0x52   : > { %s4504_s8 = sld [smem:[#allocation30_spill]] }
  0x58   : > { %s3453_s24 = scalar_lea.hbm %s4504_s8, 512 }
  0x59   : > { %p3454_p11 = scmp.ne.s32.totalorder %s4504_s8, %s3453_s24  ;;  %p3460_p0 = scmp.lt.u32.totalorder %s3453_s24, %s4504_s8 }
  0x5b   : > { %p3456_p12 = pnand %p3454_p11, %p3853_p8 }
  0x5d   : > { %p3457_p13 = pneg %p3456_p12 }
  0x5f   : > { %p3462_p2 = pnand %p3460_p0, %p3457_p13 }
  0x61   : > { %3465 = shalt.err (!%p3462_p2)
}
  0x62   : > { %s3466_s17 = scalar_lea.vmem %s423_s22, 512  ;;  %p3474_p5 = scmp.lt.s32.totalorder %s423_s22, %s423_s22 }
  0x63   : > { %p3467_p4 = scmp.ne.s32.totalorder %s423_s22, %s3466_s17  ;;  %p3475_p10 = scmp.lt.s32.totalorder %s3466_s17, %s3466_s17 }
  0x65   : > { %p3469_p7 = pnand %p3467_p4, %p3853_p8  ;;  %p3476_p1 = por %p3475_p10, %p3474_p5 }
  0x67   : > { %p3470_p9 = pneg %p3469_p7 }
  0x69   : > { %p3477_p3 = pnand %p3476_p1, %p3470_p9 }
  0x6b   : > { %3480 = shalt.err (!%p3477_p3)
}
  0x6c   : > { %3264 = dma.hbm_to_vmem [thread:$0]  (!%p3837_p6), %s4504_s8, 512, %s423_s22, [#allocation15], %s3700_s28, %s3700_s28, %s3701_s23  }
  0x6d   : > { %s3702_s4 = smov [#allocation13]   ;;  %s3703_s10 = smov [#allocation16]  }
  0x6e   : > { %s409_s9 = sshll.u32 %s3702_s4, 4  ;;  %s441_s24 = sshll.u32 %s3703_s10, 4  ;;  %s410_s9 = int_to_ptr.vmem [resolvable:$true] %s409_s9  ;;  %s442_s24 = int_to_ptr.vmem [resolvable:$true] %s441_s24 }
  0x6f   : > { %s4505_s7 = sld [smem:[#allocation29_spill]] }
  0x75   : > { %s3481_s21 = scalar_lea.hbm %s4505_s7, 512 }
  0x76   : > { %p3482_p1 = scmp.ne.s32.totalorder %s4505_s7, %s3481_s21  ;;  %p3488_p12 = scmp.lt.u32.totalorder %s3481_s21, %s4505_s7 }
  0x78   : > { %p3484_p3 = pnand %p3482_p1, %p3853_p8 }
  0x7a   : > { %p3485_p11 = pneg %p3484_p3 }
  0x7c   : > { %p3490_p13 = pnand %p3488_p12, %p3485_p11 }
  0x7e   : > { %3493 = shalt.err (!%p3490_p13)
}
  0x7f   : > { %s3494_s22 = scalar_lea.vmem %s410_s9, 512  ;;  %p3502_p7 = scmp.lt.s32.totalorder %s410_s9, %s410_s9 }
  0x80   : > { %p3495_p0 = scmp.ne.s32.totalorder %s410_s9, %s3494_s22  ;;  %p3503_p9 = scmp.lt.s32.totalorder %s3494_s22, %s3494_s22 }
  0x82   : > { %p3497_p2 = pnand %p3495_p0, %p3853_p8  ;;  %p3504_p5 = por %p3503_p9, %p3502_p7 }
  0x84   : > { %p3498_p4 = pneg %p3497_p2 }
  0x86   : > { %p3505_p10 = pnand %p3504_p5, %p3498_p4 }
  0x88   : > { %3508 = shalt.err (!%p3505_p10)
}
  0x89   : > { %3261 = dma.hbm_to_vmem [thread:$0]  (!%p3837_p6), %s4505_s7, 512, %s410_s9, [#allocation12], %s3700_s28, %s3700_s28, %s3701_s23  }
  0x8a   : > { %s4506_s11 = sld [smem:[#allocation33_spill]] }
  0x90   : > { %s3509_s16 = scalar_lea.hbm %s4506_s11, 256 }
  0x91   : > { %p3510_p1 = scmp.ne.s32.totalorder %s4506_s11, %s3509_s16  ;;  %p3516_p12 = scmp.lt.u32.totalorder %s3509_s16, %s4506_s11 }
  0x93   : > { %p3512_p3 = pnand %p3510_p1, %p3853_p8 }
  0x95   : > { %p3513_p11 = pneg %p3512_p3 }
  0x97   : > { %p3518_p13 = pnand %p3516_p12, %p3513_p11 }
  0x99   : > { %3521 = shalt.err (!%p3518_p13)
}
  0x9a   : > { %s3522_s20 = scalar_lea.vmem %s442_s24, 256  ;;  %p3530_p7 = scmp.lt.s32.totalorder %s442_s24, %s442_s24 }
  0x9b   : > { %p3523_p0 = scmp.ne.s32.totalorder %s442_s24, %s3522_s20  ;;  %p3531_p9 = scmp.lt.s32.totalorder %s3522_s20, %s3522_s20 }
  0x9d   : > { %p3525_p2 = pnand %p3523_p0, %p3853_p8  ;;  %p3532_p5 = por %p3531_p9, %p3530_p7 }
  0x9f   : > { %p3526_p4 = pneg %p3525_p2 }
  0xa1   : > { %p3533_p10 = pnand %p3532_p5, %p3526_p4 }
  0xa3   : > { %3536 = shalt.err (!%p3533_p10)
}
  0xa4   : > { %3267 = dma.hbm_to_vmem [thread:$0]  (!%p3837_p6), %s4506_s11, 256, %s442_s24, [#allocation15], %s3700_s28, %s3700_s28, %s3701_s23  }
  0xa5   : > { %s2862_s12 = sadd.s32 4294967294, %s3695_s30   ;;  %s46_s18 = sadd.s32 1, %s3691_s29 }
  0xa6   : > { %s53_s5 = sadd.s32 1, %s3683_s27  ;;  %p48_p8 = scmp.ge.s32.totalorder %s46_s18, 2 }
  0xa7   : > { %p60_p1 = scmp.ne.s32.totalorder %s3683_s27, %s3679_s26  ;;  %p61_p3 = scmp.eq.s32.totalorder %s3695_s30, 0 }
  0xa8   : > { %p66_p11 = scmp.ne.s32.totalorder %s3679_s26, %s3675_s25  ;;  %s4537_s18 = smov (%p48_p8, %s46_s18), 0 }
  0xa9   : > { %p3977_p12 = por %p61_p3, %p60_p1  ;;  %p4508_p13 = scmp.eq.s32.totalorder %s3821_s14, 0 }
  0xaa   : > { %s50_s23 = ssub.s32 %s3691_s29, %s4537_s18  ;;  %p349_p0 = scmp.eq.s32.totalorder %s3821_s14, 1 }
  0xab   : > { %p3983_p6 = por %p4508_p13, %p66_p11  ;;  %p51_p2 = scmp.eq.s32.totalorder %s50_s23, 0 }
  0xac   : > { %p355_p4 = scmp.eq.s32.totalorder %s2862_s12, 1  ;;  %p3990_p7 = por %p349_p0, %p60_p1 }
  0xad   : > { %s4509_s28 = scalar_select %p3983_p6, 1, 0 }
  0xae   : > { %s4510_s24 = scalar_select %p3990_p7, 1, 0 }
  0xaf   : > { %p3284_p9 = scmp.lt.s32.totalorder %s3695_s30, 2  ;;  %p3998_p5 = por %p355_p4, %p66_p11 }
  0xb0   : > { %s3996_s4 = scalar_select %p51_p2, %s3683_s27, %s53_s5  }
  0xb1   : > { %s4511_s10 = scalar_select %p3998_p5, 1, 0 }
  0xb2   : > { %s458_s16 = sand.u32 1, %s3683_s27   ;;  %s2871_s21 = sshll.u32 %s3691_s29, 7 }
  0xb3   : > { %s4003_s19 = sshll.u32 %s458_s16, 3  ;;  %s4009_s20 = scalar_lea.hbm %s4465_s0, %s2871_s21 }
  0xb4   : > { %s462_s9 = scalar_lea.vmem [#allocation5], %s4003_s19  ;;  %p4016_p10 = pnand %p3284_p9, %p3977_p12 }
  0xb5   : > { %s469_s22 = sshll.u32 %s462_s9, 4  ;;  %s4023_s13 = scalar_lea.hbm %s4466_s1, %s2871_s21  ;;  %s4012_s22 = int_to_ptr.vmem [resolvable:$true] %s469_s22 }
  0xb6   : > { %s476_s17 = sand.u32 1, %s3695_s30   ;;  %s459_s6 = scalar_lea.sflag [#allocation6], %s458_s16 }
  0xb7   : > { %s3537_s7 = scalar_lea.hbm %s4009_s20, 128  ;;  %p3539_p1 = pneg %p4016_p10 }
  0xb8   : > { %p3538_p8 = scmp.ne.s32.totalorder %s4009_s20, %s3537_s7  ;;  %s3542_s8 = scalar_lea.hbm %s4465_s0, 256 }
  0xb9   : > { %p3543_p12 = scmp.lt.u32.totalorder %s4009_s20, %s4465_s0  ;;  %p3544_p13 = scmp.lt.u32.totalorder %s3542_s8, %s3537_s7 }
  0xba   : > { %p3540_p3 = pnand %p3539_p1, %p3538_p8  ;;  %p3546_p2 = scmp.lt.u32.totalorder %s3537_s7, %s4009_s20 }
  0xbb   : > { %p3545_p0 = por %p3544_p13, %p3543_p12 }
  0xbc   : > { %p3541_p11 = pneg %p3540_p3 }
  0xbd   : > { %p3547_p4 = por %p3546_p2, %p3545_p0 }
  0xbf   : > { %p3548_p9 = pnand %p3547_p4, %p3541_p11 }
  0xc1   : > { %3551 = shalt.err (!%p3548_p9)
}
  0xc2   : > { %s3552_s16 = scalar_lea.vmem %s4012_s22, 128  ;;  %s3704_s21 = smov [#allocation5]  }
  0xc3   : > { %p3553_p8 = scmp.ne.s32.totalorder %s4012_s22, %s3552_s16  ;;  %s3557_s23 = sshll.u32 %s3704_s21, 4  ;;  %s3558_s23 = int_to_ptr.vmem [resolvable:$false] %s3557_s23 }
  0xc4   : > { %s3559_s11 = scalar_lea.vmem %s3558_s23, 256  ;;  %p3560_p7 = scmp.lt.s32.totalorder %s4012_s22, %s3558_s23 }
  0xc5   : > { %p3555_p3 = pnand %p3553_p8, %p3539_p1  ;;  %p3561_p12 = scmp.lt.s32.totalorder %s3559_s11, %s3552_s16 }
  0xc7   : > { %p3556_p5 = pneg %p3555_p3  ;;  %p3562_p13 = por %p3561_p12, %p3560_p7 }
  0xc9   : > { %p3563_p0 = pnand %p3562_p13, %p3556_p5 }
  0xcb   : > { %3566 = shalt.err (!%p3563_p0)
}
  0xcc   : > { %3271 = dma.hbm_to_vmem [thread:$0]  (!%p4016_p10), %s4009_s20, 128, %s4012_s22, %s459_s6  }
  0xcd   : > { %s480_s7 = scalar_lea.vmem [#allocation8], %s4003_s19  ;;  %s477_s2 = scalar_lea.sflag [#allocation9], %s476_s17 }
  0xce   : > { %s487_s8 = sshll.u32 %s480_s7, 4  ;;  %s3567_s9 = scalar_lea.hbm %s4023_s13, 128  ;;  %s488_s8 = int_to_ptr.vmem [resolvable:$true] %s487_s8 }
  0xcf   : > { %p3568_p7 = scmp.ne.s32.totalorder %s4023_s13, %s3567_s9  ;;  %s3572_s21 = scalar_lea.hbm %s4466_s1, 256 }
  0xd0   : > { %p3573_p2 = scmp.lt.u32.totalorder %s4023_s13, %s4466_s1  ;;  %p3574_p4 = scmp.lt.u32.totalorder %s3572_s21, %s3567_s9 }
  0xd1   : > { %p3570_p5 = pnand %p3568_p7, %p3539_p1  ;;  %p3576_p8 = scmp.lt.u32.totalorder %s3567_s9, %s4023_s13 }
  0xd2   : > { %p3575_p9 = por %p3574_p4, %p3573_p2 }
  0xd3   : > { %p3571_p11 = pneg %p3570_p5 }
  0xd4   : > { %p3577_p3 = por %p3576_p8, %p3575_p9 }
  0xd6   : > { %p3578_p12 = pnand %p3577_p3, %p3571_p11 }
  0xd8   : > { %3581 = shalt.err (!%p3578_p12)
}
  0xd9   : > { %s3582_s6 = scalar_lea.vmem %s488_s8, 128  ;;  %s3705_s19 = smov [#allocation8]  }
  0xda   : > { %p3583_p13 = scmp.ne.s32.totalorder %s488_s8, %s3582_s6  ;;  %s3587_s20 = sshll.u32 %s3705_s19, 4  ;;  %s3588_s20 = int_to_ptr.vmem [resolvable:$false] %s3587_s20 }
  0xdb   : > { %s3589_s22 = scalar_lea.vmem %s3588_s20, 256  ;;  %p3590_p5 = scmp.lt.s32.totalorder %s488_s8, %s3588_s20 }
  0xdc   : > { %p3585_p0 = pnand %p3583_p13, %p3539_p1  ;;  %p3591_p6 = scmp.lt.s32.totalorder %s3589_s22, %s3582_s6 }
  0xde   : > { %p3586_p7 = pneg %p3585_p0  ;;  %p3592_p2 = por %p3591_p6, %p3590_p5 }
  0xe0   : > { %p3593_p4 = pnand %p3592_p2, %p3586_p7 }
  0xe2   : > { %3596 = shalt.err (!%p3593_p4)
}
  0xe3   : > { %3274 = dma.hbm_to_vmem [thread:$0]  (!%p4016_p10), %s4023_s13, 128, %s488_s8, %s477_s2  }
  0xe4   : > { %p4513_p11 = scmp.ne.s32.totalorder %s4499_s15, 0 }
  0xe5   : > { %s4076_s17 = sand.u32 (!%p4513_p11), 1, %s3679_s26   ;;  %p4514_p6 = scmp.ne.s32.totalorder (!%p4513_p11), %s4509_s28, 0 }
  0xe6   : > { %496 = sbr.rel (%p4513_p11) target bundleno = 4183 (0x1057), region = 72  ;;  %s4079_s7 = sshll.u32 (!%p4513_p11), %s4076_s17, 3 }
  0xe7   : > { %s499_s9 = scalar_lea.sflag (!%p4513_p11), [#allocation6], %s4076_s17  ;;  %s502_s5 = scalar_lea.vmem (!%p4513_p11), [#allocation5], %s4079_s7 }
  0xed   : > { %3650 = dma.done.wait (%p4514_p6), %s499_s9, 128  }
  0xee   : > { %3652 = vsyncadd (%p4514_p6), %s499_s9, 4294967168  ;;  %s507_s15 = sand.u32 1, %s3821_s14   ;;  %s511_s13 = scalar_lea.vmem [#allocation8], %s4079_s7 }
  0xef   : > { %s508_s12 = scalar_lea.sflag [#allocation9], %s507_s15 }
  0xf0   : > { %3654 = dma.done.wait (%p4514_p6), %s508_s12, 128  }
  0xf1   : > { %3656 = vsyncadd (%p4514_p6), %s508_s12, 4294967168  ;;  %p4515_p10 = scmp.eq.s32.totalorder %s3821_s14, 0 }
  0xf3   : > { %3658 = dma.done.wait (%p4515_p10), [#allocation9], 512   ;;  %p4516_p1 = pmov %p4515_p10 }
  0xf5   : > { %3660 = vsyncadd (%p4516_p1), [#allocation9], 4294966784  ;;  %p4517_p9 = pmov %p4516_p1 }
  0xf6   : > { %p4518_p8 = pmov %p4516_p1 }
  0xf7   : > { %3662 = dma.done.wait (%p4517_p9), [#allocation12], 1024  }
  0xf8   : > { %3664 = vsyncadd (%p4518_p8), [#allocation12], 4294966272  ;;  %p4519_p3 = pmov %p4516_p1 }
  0xf9   : > { %p4520_p12 = pmov %p4516_p1 }
  0xfa   : > { %3666 = dma.done.wait (%p4519_p3), [#allocation15], 768  }
  0xfb   : > { %3668 = vsyncadd (%p4520_p12), [#allocation15], 4294966528  ;;  %v3706_v0 = vmov 0.0|0.0   ;;  %vm3707_vm0 = vmmov 0   ;;  %v3708_v1 = vmov 0.0   ;;  %v588_v2 = vld [vmem:[%s4468_s3] sm:$0xff]  ;;  %v592_v22 = vlaneseq }
  0xfc   : > { %3172 = vmatprep.subr.bf16.mxu1 %v3706_v0  ;;  %3004 = vmatprep.mubr.msk.f32.mxu1 %vm3707_vm0, %v3708_v1  ;;  %v589_v3 = vld [vmem:[%s4468_s3 + $0x8] sm:$0xff]  ;;  %v590_v4 = vld [vmem:[%s4468_s3 + $0x10] sm:$0xff]  ;;  %v591_v6 = vld [vmem:[%s4468_s3 + $0x18] sm:$0xff]  ;;  %s4521_s20 = sld [smem:[#allocation25_spill]]  ;;  %vm596_vm1 = vcmask 261120   ;;  %s4522_s14 = sld [smem:[#allocation32_spill]] }
  0xfd   : > { %3184 = vmatprep.subr.bf16.mxu0 %v3706_v0  ;;  %3026 = vmatprep.mubr.msk.f32.mxu0 %vm3707_vm0, %v3708_v1  ;;  %v3173_v5 = vpack.c.bf16 %v589_v3, %v588_v2  ;;  %v3176_v11 = vpack.c.bf16 %v591_v6, %v590_v4  ;;  %v672_v13 = vld [vmem:[#allocation11] sm:$0xff]  ;;  %v673_v14 = vld [vmem:[#allocation11 + $0x8] sm:$0xff]  ;;  %v674_v18 = vld [vmem:[#allocation11 + $0x10] sm:$0xff]  ;;  %v4158_v23 = vshrl.u32 %v592_v22, 7  ;;  %vm670_vm2 = vcmask 523264   ;;  %s3710_s16 = smov 120  }
  0xfe   : > { %v4139_v16 = vld [vmem:[%s502_s5] sm:$0xff]  ;;  %v3179_v17 = vpack.c.bf16 %v673_v14, %v672_v13  ;;  %v675_v19 = vld [vmem:[#allocation11 + $0x18] sm:$0xff]  ;;  %vm840_vm3 = vcmask 64512   ;;  %s3711_s21 = smov 104   ;;  %s3712_s23 = smov 96   ;;  %vm1176_vm4 = vcmask 130112  }
  0xff   : > { %3174 = vmatpush3.bf16.msra.mxu1 %v3173_v5  ;;  %v3182_v20 = vpack.c.bf16 %v675_v19, %v674_v18  ;;  %v587_v21 = vld [vmem:[%s511_s13] sm:$0xff]  ;;  %v4161_v24 = vsub.s32 0, %v4158_v23  ;;  %v4168_v32 = vld [vmem:[#allocation16] sm:$0xff]  ;;  %s3709_s13 = smov 112   ;;  %v4192_v36 = vsub.s32 1, %v4158_v23  ;;  %s3713_s11 = smov 80  }
 0x100   : > { %3175 = vmatprep.subr.bf16.mxu1 %v3706_v0  ;;  %s3714_s6 = smov 72   ;;  %s3715_s19 = smov 88   ;;  %vm1349_vm5 = vcmask 195712   ;;  %vm1522_vm6 = vcmask 261312  }
 0x101   : > { %v764_v33 = vrot.slane %v4168_v32, %v4161_v24  ;;  %s4523_s15 = sld [smem:[#allocation26_spill]]  ;;  %s3716_s22 = smov 8  }
 0x102   : > { %v757_v7 = vld [vmem:[%s4521_s20] sm:$0xff]  ;;  %v758_v8 = vld [vmem:[%s4521_s20 + $0x8] sm:$0xff]  ;;  %v759_v9 = vld [vmem:[%s4521_s20 + $0x10] sm:$0xff]  ;;  %s3717_s9 = smov 16   ;;  %s3718_s12 = smov 24  }
 0x103   : > { %v760_v10 = vld [vmem:[%s4521_s20 + $0x18] sm:$0xff]  ;;  %v3185_v12 = vpack.c.bf16 %v758_v8, %v757_v7  ;;  %3177 = vmatpush3.bf16.msra.mxu1 %v3176_v11  ;;  %v585_v25 = vld [vmem:[%s4522_s14] sm:$0x3]  ;;  %s578_s8 = scalar_lea.vmem [#allocation17], %s4079_s7  ;;  %p4528_p0 = scmp.ne.s32.totalorder %s4510_s24, 0 }
 0x104   : > { %v3188_v15 = vpack.c.bf16 %v760_v10, %v759_v9  ;;  %3178 = vmatprep.subr.bf16.mxu1 %v3706_v0  ;;  %v595_v26 = vrot.slane %v585_v25, %v4161_v24  ;;  %v679_v37 = vrot.slane %v585_v25, %v4192_v36  ;;  %s2710_s5 = sshll.u32 %s578_s8, 4  ;;  %s3719_s7 = smov [#allocation17]   ;;  %s4417_s5 = int_to_ptr.vmem [resolvable:$true] %s2710_s5 }
 0x105   : > { %3186 = vmatpush3.bf16.msra.mxu0 %v3185_v12 }
 0x106   : > { %3187 = vmatprep.subr.bf16.mxu0 %v3706_v0  ;;  %3005 = vmatmul.mubr.msk.f32.vlgmr.msra.gmra.mrb[0].mxu1 %vm596_vm1, %v4139_v16 }
 0x107   : > { %3180 = vmatpush3.bf16.msra.mxu1 %v3179_v17  ;;  %3015 = vmatprep.mubr.msk.f32.mxu1 %vm3707_vm0, %v3708_v1 }
 0x108   : > { %3181 = vmatprep.subr.bf16.mxu1 %v3706_v0 }
 0x109   : > { %3189 = vmatpush3.bf16.msra.mxu0 %v3188_v15 }
 0x10a   : > { %3039 = vmatprep.subr.mxu0 %v3708_v1 }
 0x10b   : > { %3183 = vmatpush3.bf16.msra.mxu1 %v3182_v20 }
 0x10c   : > { %3027 = vmatmul.mubr.msk.f32.vlgmr.msra.gmra.mrb[0].mxu0 %vm596_vm1, %v4139_v16  ;;  %3029 = vmatprep.subr.mxu1 %v3708_v1 }
 0x10d   : > { %3041 = vmatprep.mubr.msk.f32.mxu0 %vm3707_vm0, %v3708_v1 }
 0x10e   : > { %3016 = vmatmul.mubr.msk.f32.vlgmr.msra.gmra.mrb[2].mxu1 %vm596_vm1, %v587_v21 }
 0x10f   : > { %3031 = vmatprep.mubr.msk.f32.mxu1 %vm3707_vm0, %v3708_v1 }
 0x1d9   : > { %v666_v27 = vpop.f32.mrb[0].mxu1 }
 0x1da   : > { %v667_v28 = vadd.f32 %v666_v27, %v595_v26  ;;  %v3006_v29 = vpop.f32.mrb[1].mxu1 }
 0x1dc   : > { %671 = vst.msk [vmem:[#allocation2] sm:$0xff] %vm670_vm2, %v667_v28 }
 0x1df   : > { %v835_v30 = vpop.f32.mrb[0].mxu0 }
 0x1e0   : > { %v3028_v31 = vpop.f32.mrb[1].mxu0  ;;  %v836_v35 = vadd.f32 %v835_v30, %v764_v33  ;;  %v1526_v33 = vld [vmem:[%s4523_s15 + $0x8] sm:$0xff] }
 0x1e1   : > { %v749_v38 = vpop.f32.mrb[2].mxu1  ;;  %v1525_v31 = vld [vmem:[%s4523_s15] sm:$0xff] }
 0x1e2   : > { %v750_v39 = vadd.f32 %v749_v38, %v679_v37  ;;  %v3017_v40 = vpop.f32.mrb[3].mxu1  ;;  %v1527_v37 = vld [vmem:[%s4523_s15 + $0x10] sm:$0xff]  ;;  %v1528_v38 = vld [vmem:[%s4523_s15 + $0x18] sm:$0xff] }
 0x1e3   : > { %v4172_v34 = vld [vmem:[#allocation2] sm:$0xff] }
 0x1e4   : > { %1182 = vrot.lane.b32.xlu1 %v4172_v34, %s3709_s13  ;;  %1009 = vrot.lane.b32.xlu0 %v4172_v34, %s3710_s16  ;;  %753 = vst.msk [vmem:[#allocation3] sm:$0xff] %vm670_vm2, %v750_v39  ;;  %v3194_v39 = vpack.c.bf16 %v1528_v38, %v1527_v37 }
 0x1e5   : > { %3030 = vmatpush3.xpose.msk.msra.mxu1 %vm840_vm3, %v4172_v34 }
 0x1e6   : > { %3034 = vmatprep.subr.mxu1 %v3708_v1 }
 0x1e8   : > { %3032 = vmatmul.mubr.msk.f32.vlgmr.msra.gmra.mrb[4].mxu1 %vm840_vm3, %v836_v35  ;;  %1179 = vrot.lane.b32.xlu1 %v836_v35, %s3709_s13 }
 0x1e9   : > { %1006 = vrot.lane.b32.xlu0 %v836_v35, %s3710_s16  ;;  %3036 = vmatprep.mubr.msk.f32.mxu1 %vm3707_vm0, %v3708_v1 }
 0x1ec   : > { %1352 = vrot.lane.b32.xlu1 %v836_v35, %s3711_s21  ;;  %v3191_v35 = vpack.c.bf16 %v1526_v33, %v1525_v31 }
 0x1ed   : > { %1355 = vrot.lane.b32.xlu0 %v4172_v34, %s3711_s21 }
 0x1f0   : > { %926 = vrot.lane.b32.xlu1 %v4172_v34, %s3712_s23 }
 0x256   : > { %v1183_v41 = vpop.permute.xlu1 %1182  ;;  %v1010_v42 = vpop.permute.xlu0 %1009 }
 0x257   : > { %3040 = vmatpush3.xpose.msk.msra.mxu0 %vm840_vm3, %v1010_v42 }
 0x258   : > { %3049 = vmatprep.subr.mxu0 %v3708_v1 }
 0x25a   : > { %v1180_v43 = vpop.permute.xlu1 %1179 }
 0x25b   : > { %v1007_v44 = vpop.permute.xlu0 %1006 }
 0x25c   : > { %3042 = vmatmul.mubr.msk.f32.vlgmr.msra.gmra.mrb[2].mxu0 %vm840_vm3, %v1007_v44 }
 0x25d   : > { %3050 = vmatpush3.xpose.msk.msra.mxu0 %vm840_vm3, %v1183_v41  ;;  %3051 = vmatprep.mubr.msk.f32.mxu0 %vm3707_vm0, %v3708_v1 }
 0x25e   : > { %v1353_v45 = vpop.permute.xlu1 %1352  ;;  %3059 = vmatprep.subr.mxu0 %v3708_v1 }
 0x25f   : > { %v1356_v46 = vpop.permute.xlu0 %1355 }
 0x260   : > { %3052 = vmatmul.mubr.msk.f32.vlgmr.msra.gmra.mrb[4].mxu0 %vm840_vm3, %v1180_v43 }
 0x261   : > { %3060 = vmatpush3.xpose.msk.msra.mxu0 %vm840_vm3, %v1356_v46  ;;  %3061 = vmatprep.mubr.msk.f32.mxu0 %vm3707_vm0, %v3708_v1 }
 0x262   : > { %v927_v47 = vpop.permute.xlu1 %926  ;;  %3190 = vmatprep.subr.bf16.mxu0 %v3706_v0 }
 0x263   : > { %3035 = vmatpush3.msra.mxu1 %v927_v47 }
 0x264   : > { %3062 = vmatmul.mubr.msk.f32.vlgmr.msra.gmra.mrb[6].mxu0 %vm840_vm3, %v1353_v45  ;;  %3044 = vmatprep.subr.mxu1 %v3708_v1 }
 0x265   : > { %3077 = vmatprep.mubr.msk.f32.mxu0 %vm3707_vm0, %v3708_v1  ;;  %3192 = vmatpush3.bf16.msra.mxu0 %v3191_v35 }
 0x266   : > { %3193 = vmatprep.subr.bf16.mxu0 %v3706_v0 }
 0x269   : > { %3195 = vmatpush3.bf16.msra.mxu0 %v3194_v39 }
 0x26a   : > { %3091 = vmatprep.subr.mxu0 %v3708_v1 }
 0x2bb   : > { %v913_v48 = vpop.f32.mrb[4].mxu1 }
 0x2bc   : > { %v3033_v49 = vpop.f32.mrb[5].mxu1  ;;  %v917_v50 = vsel %vm840_vm3, %v913_v48, -inf }
 0x2bd   : > { %918 = vmax.xlane.f32.xlu0 %v917_v50 }
 0x32f   : > { %v1081_v51 = vpop.f32.mrb[2].mxu0 }
 0x330   : > { %v3043_v52 = vpop.f32.mrb[3].mxu0  ;;  %v1085_v53 = vsel %vm840_vm3, %v1081_v51, -inf }
 0x331   : > { %1086 = vmax.xlane.f32.xlu1 %v1085_v53 }
 0x333   : > { %v1254_v54 = vpop.f32.mrb[4].mxu0 }
 0x334   : > { %v3053_v55 = vpop.f32.mrb[5].mxu0  ;;  %v1258_v56 = vsel %vm840_vm3, %v1254_v54, -inf }
 0x335   : > { %1259 = vmax.xlane.f32.xlu0 %v1258_v56  ;;  %v4263_v56 = vld [vmem:[#allocation3] sm:$0xff] }
 0x337   : > { %v1427_v57 = vpop.f32.mrb[6].mxu0 }
 0x338   : > { %v3063_v58 = vpop.f32.mrb[7].mxu0  ;;  %v1431_v59 = vsel %vm840_vm3, %v1427_v57, -inf }
 0x339   : > { %1432 = vmax.xlane.f32.xlu0 %v1431_v59 }
 0x342   : > { %1267 = vrot.lane.b32.xlu1 %v4172_v34, %s3713_s11 }
 0x346   : > { %1440 = vrot.lane.b32.xlu1 %v4172_v34, %s3714_s6 }
 0x34a   : > { %v919_v60 = vpop.xlane.xlu0 %918 }
 0x34b   : > { %v920_v61 = vsub.f32 %v913_v48, %v919_v60 }
 0x34d   : > { %v921_v62 = vmul.f32 1.442695, %v920_v61 }
 0x34f   : > { %3359 = vpow2.f32 %v921_v62  ;;  %1094 = vrot.lane.b32.xlu0 %v4172_v34, %s3715_s19 }
 0x359   : > { %v3360_v63 = vpop.eup %3359 }
 0x35a   : > { %3037 = vmatmul.mubr.msk.f32.vlgmr.msra.gmra.mrb[6].mxu1 %vm840_vm3, %v3360_v63  ;;  %v923_v21 = vsel %vm840_vm3, %v3360_v63, 0.0 }
 0x35b   : > { %3046 = vmatprep.mubr.msk.f32.mxu1 %vm3707_vm0, %v3708_v1 }
 0x3be   : > { %v1087_v2 = vpop.xlane.xlu1 %1086 }
 0x3bf   : > { %v1088_v3 = vsub.f32 %v1081_v51, %v1087_v2 }
 0x3c1   : > { %v1089_v4 = vmul.f32 1.442695, %v1088_v3 }
 0x3c2   : > { %v1260_v5 = vpop.xlane.xlu0 %1259  ;;  %v1268_v12 = vpop.permute.xlu1 %1267 }
 0x3c3   : > { %3361 = vpow2.f32 %v1089_v4  ;;  %v1261_v6 = vsub.f32 %v1254_v54, %v1260_v5 }
 0x3c5   : > { %v1262_v7 = vmul.f32 1.442695, %v1261_v6  ;;  %v1631_v6 = vld [vmem:[#allocation10] sm:$0xff] }
 0x3c6   : > { %v1433_v8 = vpop.xlane.xlu0 %1432  ;;  %v1441_v17 = vpop.permute.xlu1 %1440 }
 0x3c7   : > { %3363 = vpow2.f32 %v1262_v7  ;;  %v1434_v9 = vsub.f32 %v1427_v57, %v1433_v8  ;;  %v1532_v57 = vrot.slane %v4168_v32, %v4192_v36  ;;  %v1632_v7 = vld [vmem:[#allocation10 + $0x8] sm:$0xff] }
 0x3c8   : > { %v3197_v8 = vpack.c.bf16 %v1632_v7, %v1631_v6 }
 0x3c9   : > { %v1435_v10 = vmul.f32 1.442695, %v1434_v9  ;;  %v1633_v9 = vld [vmem:[#allocation10 + $0x10] sm:$0xff] }
 0x3ca   : > { %v1095_v11 = vpop.permute.xlu0 %1094 }
 0x3cb   : > { %3365 = vpow2.f32 %v1435_v10  ;;  %3045 = vmatpush3.msra.mxu1 %v1095_v11  ;;  %v1634_v10 = vld [vmem:[#allocation10 + $0x18] sm:$0xff] }
 0x3cc   : > { %3054 = vmatprep.subr.mxu1 %v3708_v1 }
 0x3cd   : > { %v3362_v13 = vpop.eup %3361 }
 0x3ce   : > { %3047 = vmatmul.mubr.msk.f32.vlgmr.msra.gmra.mrb[8].mxu1 %vm840_vm3, %v3362_v13  ;;  %v1091_v14 = vsel %vm840_vm3, %v3362_v13, 0.0 }
 0x3cf   : > { %3055 = vmatpush3.msra.mxu1 %v1268_v12  ;;  %1092 = vadd.xlane.f32.xlu0 %v1091_v14  ;;  %v1623_v14 = vsub.s32 5, %v4158_v23 }
 0x3d0   : > { %3056 = vmatprep.mubr.msk.f32.mxu1 %vm3707_vm0, %v3708_v1  ;;  %3064 = vmatprep.subr.mxu1 %v3708_v1 }
 0x3d1   : > { %v3364_v15 = vpop.eup %3363 }
 0x3d2   : > { %3057 = vmatmul.mubr.msk.f32.vlgmr.msra.gmra.mrb[10].mxu1 %vm840_vm3, %v3364_v15  ;;  %v1264_v18 = vsel %vm840_vm3, %v3364_v15, 0.0  ;;  %v1628_v15 = vsub.s32 6, %v4158_v23 }
 0x3d3   : > { %3065 = vmatpush3.msra.mxu1 %v1441_v17  ;;  %1265 = vadd.xlane.f32.xlu1 %v1264_v18  ;;  %v1624_v17 = vrot.slane %v4168_v32, %v1623_v14 }
 0x3d4   : > { %3066 = vmatprep.mubr.msk.f32.mxu1 %vm3707_vm0, %v3708_v1  ;;  %3196 = vmatprep.subr.bf16.mxu1 %v3706_v0 }
 0x3d5   : > { %v3366_v19 = vpop.eup %3365 }
 0x3d6   : > { %3067 = vmatmul.mubr.msk.f32.vlgmr.msra.gmra.mrb[12].mxu1 %vm840_vm3, %v3366_v19  ;;  %v1437_v20 = vsel %vm840_vm3, %v3366_v19, 0.0 }
 0x3d7   : > { %1438 = vadd.xlane.f32.xlu0 %v1437_v20  ;;  %3088 = vmatprep.mubr.msk.f32.mxu1 %vm3707_vm0, %v3708_v1  ;;  %v1629_v20 = vrot.slane %v4168_v32, %v1628_v15 }
 0x3d8   : > { %3198 = vmatpush3.bf16.msra.mxu1 %v3197_v8 }
 0x3d9   : > { %3199 = vmatprep.subr.bf16.mxu1 %v3706_v0 }
 0x3db   : > { %924 = vadd.xlane.f32.xlu0 %v923_v21 }
 0x42d   : > { %v998_v22 = vpop.f32.mrb[6].mxu1 }
 0x42e   : > { %v3038_v25 = vpop.f32.mrb[7].mxu1 }
 0x42f   : > { %v1637_v25 = vsub.s32 2, %v4158_v23 }
 0x45c   : > { %v1093_v26 = vpop.xlane.xlu0 %1092 }
 0x460   : > { %v1266_v34 = vpop.xlane.xlu1 %1265 }
 0x464   : > { %v1439_v27 = vpop.xlane.xlu0 %1438 }
 0x468   : > { %v925_v28 = vpop.xlane.xlu0 %924 }
 0x469   : > { %3367 = vrcp.f32 %v925_v28 }
 0x46a   : > { %3369 = vrcp.f32 %v1093_v26  ;;  %v1638_v26 = vrot.slane %v4168_v32, %v1637_v25 }
 0x46b   : > { %3371 = vrcp.f32 %v1266_v34 }
 0x46c   : > { %3373 = vrcp.f32 %v1439_v27 }
 0x473   : > { %v3368_v29 = vpop.eup %3367 }
 0x474   : > { %v1003_v30 = vmul.f32 %v3368_v29, %v998_v22  ;;  %v3370_v40 = vpop.eup %3369 }
 0x475   : > { %v3372_v44 = vpop.eup %3371 }
 0x476   : > { %1004 = vst.msk [vmem:[#allocation4] sm:$0xff] %vm840_vm3, %v1003_v30  ;;  %v3374_v48 = vpop.eup %3373 }
 0x4a1   : > { %v1166_v41 = vpop.f32.mrb[8].mxu1 }
 0x4a2   : > { %v1171_v42 = vmul.f32 %v3370_v40, %v1166_v41  ;;  %v3048_v43 = vpop.f32.mrb[9].mxu1 }
 0x4a4   : > { %1173 = vrot.lane.b32.xlu1 %v1171_v42, %s3716_s22 }
 0x4a5   : > { %v1339_v45 = vpop.f32.mrb[10].mxu1 }
 0x4a6   : > { %v1344_v46 = vmul.f32 %v3372_v44, %v1339_v45  ;;  %v3058_v47 = vpop.f32.mrb[11].mxu1 }
 0x4a8   : > { %1346 = vrot.lane.b32.xlu0 %v1344_v46, %s3717_s9 }
 0x4a9   : > { %v1512_v49 = vpop.f32.mrb[12].mxu1 }
 0x4aa   : > { %v1517_v50 = vmul.f32 %v3374_v48, %v1512_v49  ;;  %v3068_v51 = vpop.f32.mrb[13].mxu1 }
 0x4ac   : > { %1519 = vrot.lane.b32.xlu1 %v1517_v50, %s3718_s12 }
 0x516   : > { %v1174_v52 = vpop.permute.xlu1 %1173 }
 0x517   : > { %1177 = vst.msk [vmem:[#allocation4] sm:$0xff] %vm1176_vm4, %v1174_v52 }
 0x51a   : > { %v1347_v53 = vpop.permute.xlu0 %1346 }
 0x51b   : > { %1350 = vst.msk [vmem:[#allocation4] sm:$0xff] %vm1349_vm5, %v1347_v53 }
 0x51e   : > { %v1520_v54 = vpop.permute.xlu1 %1519 }
 0x51f   : > { %1523 = vst.msk [vmem:[#allocation4] sm:$0xff] %vm1522_vm6, %v1520_v54 }
 0x526   : > { %v1524_v55 = vld [vmem:[#allocation4] sm:$0xff] }
 0x527   : > { %3078 = vmatmul.mubr.msk.f32.vlgmr.msra.gmra.mrb[8].mxu0 %vm596_vm1, %v1524_v55 }
 0x528   : > { %3092 = vmatpush3.xpose.msk.msra.mxu0 %vm840_vm3, %v4263_v56  ;;  %3093 = vmatprep.mubr.msk.f32.mxu0 %vm3707_vm0, %v3708_v1 }
 0x529   : > { %3101 = vmatprep.subr.mxu0 %v3708_v1 }
 0x5fa   : > { %v1602_v58 = vpop.f32.mrb[8].mxu0 }
 0x5fb   : > { %v1603_v59 = vadd.f32 %v1602_v58, %v1532_v57  ;;  %v3079_v60 = vpop.f32.mrb[9].mxu0 }
 0x5fd   : > { %v1606_v61 = vadd.f32 %v1603_v59, %v4139_v16  ;;  %v3200_v16 = vpack.c.bf16 %v1634_v10, %v1633_v9 }
 0x5ff   : > { %v1607_v62 = vsel %vm596_vm1, %v1606_v61, 0.0  ;;  %3201 = vmatpush3.bf16.msra.mxu1 %v3200_v16 }
 0x600   : > { %1608 = vadd.xlane.f32.xlu1 %v1607_v62  ;;  %3096 = vmatprep.subr.mxu1 %v3708_v1 }
 0x68d   : > { %v1609_v63 = vpop.xlane.xlu1 %1608 }
 0x68e   : > { %v1611_v2 = vmul.f32 0.03125, %v1609_v63 }
 0x690   : > { %v1612_v3 = vsub.f32 %v1606_v61, %v1611_v2 }
 0x692   : > { %v1613_v4 = vmul.f32 %v1612_v3, %v1612_v3 }
 0x694   : > { %v1614_v5 = vsel %vm596_vm1, %v1613_v4, 0.0 }
 0x695   : > { %1615 = vadd.xlane.f32.xlu0 %v1614_v5 }
 0x6ab   : > { %1881 = vrot.lane.b32.xlu0 %v4263_v56, %s3710_s16 }
 0x722   : > { %v1616_v11 = vpop.xlane.xlu0 %1615 }
 0x723   : > { %v1617_v12 = vmul.f32 0.03125, %v1616_v11 }
 0x725   : > { %v1618_v13 = vadd.f32 1e-05, %v1617_v12 }
 0x726   : > { %v1882_v30 = vpop.permute.xlu0 %1881 }
 0x727   : > { %3375 = vrsqrt.f32 %v1618_v13 }
 0x731   : > { %v3376_v18 = vpop.eup %3375 }
 0x732   : > { %v1620_v19 = vmul.f32 %v3376_v18, %v1612_v3 }
 0x734   : > { %v1625_v21 = vmul.f32 %v1624_v17, %v1620_v19 }
 0x736   : > { %v4283_v22 = vadd.f32 %v1629_v20, %v1625_v21 }
 0x738   : > { %3089 = vmatmul.mubr.msk.f32.vlgmr.msra.gmra.mrb[14].mxu1 %vm596_vm1, %v4283_v22 }
 0x739   : > { %3098 = vmatprep.mubr.msk.f32.mxu1 %vm3707_vm0, %v3708_v1 }
 0x80b   : > { %v1708_v27 = vpop.f32.mrb[14].mxu1 }
 0x80c   : > { %v1709_v28 = vadd.f32 %v1708_v27, %v1638_v26  ;;  %v3090_v29 = vpop.f32.mrb[15].mxu1  ;;  %v2394_v26 = vld [vmem:[#allocation13] sm:$0xff]  ;;  %v2395_v27 = vld [vmem:[#allocation13 + $0x8] sm:$0xff] }
 0x80e   : > { %2050 = vrot.lane.b32.xlu0 %v1709_v28, %s3709_s13  ;;  %1878 = vrot.lane.b32.xlu1 %v1709_v28, %s3710_s16  ;;  %s3601_s16 = sshll.u32 %s3719_s7, 4  ;;  %s3602_s16 = int_to_ptr.vmem [resolvable:$false] %s3601_s16 }
 0x80f   : > { %3094 = vmatmul.mubr.msk.f32.vlgmr.msra.gmra.mrb[10].mxu0 %vm840_vm3, %v1709_v28  ;;  %p3604_p2 = scmp.lt.s32.totalorder %s4417_s5, %s3602_s16 }
 0x810   : > { %3102 = vmatpush3.xpose.msk.msra.mxu0 %vm840_vm3, %v1882_v30  ;;  %3103 = vmatprep.mubr.msk.f32.mxu0 %vm3707_vm0, %v3708_v1 }
 0x811   : > { %3111 = vmatprep.subr.mxu0 %v3708_v1 }
 0x812   : > { %2222 = vrot.lane.b32.xlu0 %v1709_v28, %s3711_s21  ;;  %2053 = vrot.lane.b32.xlu1 %v4263_v56, %s3709_s13  ;;  %v2396_v28 = vld [vmem:[#allocation13 + $0x10] sm:$0xff]  ;;  %s3597_s13 = scalar_lea.vmem %s4417_s5, 128 }
 0x813   : > { %p3598_p13 = scmp.ne.s32.totalorder %s4417_s5, %s3597_s13 }
 0x815   : > { %p3599_p7 = pnand %p3598_p13, %p4528_p0 }
 0x816   : > { %2225 = vrot.lane.b32.xlu1 %v4263_v56, %s3711_s21  ;;  %s4524_s21 = sld [smem:[#allocation31_spill]] }
 0x817   : > { %p3600_p5 = pneg %p3599_p7 }
 0x880   : > { %v1879_v31 = vpop.permute.xlu1 %1878  ;;  %v2051_v34 = vpop.permute.xlu0 %2050 }
 0x881   : > { %3104 = vmatmul.mubr.msk.f32.vlgmr.msra.gmra.mrb[12].mxu0 %vm840_vm3, %v1879_v31  ;;  %v3203_v31 = vpack.c.bf16 %v2395_v27, %v2394_v26  ;;  %v2591_v26 = vld [vmem:[%s4524_s21 + $0x38] sm:$0xff] }
 0x882   : > { %3113 = vmatprep.mubr.msk.f32.mxu0 %vm3707_vm0, %v3708_v1 }
 0x884   : > { %v2054_v33 = vpop.permute.xlu1 %2053  ;;  %v2223_v37 = vpop.permute.xlu0 %2222 }
 0x885   : > { %3112 = vmatpush3.xpose.msk.msra.mxu0 %vm840_vm3, %v2054_v33  ;;  %v2397_v33 = vld [vmem:[#allocation13 + $0x18] sm:$0xff] }
 0x886   : > { %3121 = vmatprep.subr.mxu0 %v3708_v1 }
 0x888   : > { %v2226_v35 = vpop.permute.xlu1 %2225  ;;  %3114 = vmatmul.mubr.msk.f32.vlgmr.msra.gmra.mrb[14].mxu0 %vm840_vm3, %v2051_v34  ;;  %v3206_v34 = vpack.c.bf16 %v2397_v33, %v2396_v28  ;;  %v2594_v33 = vsub.s32 4, %v4158_v23 }
 0x889   : > { %3122 = vmatpush3.xpose.msk.msra.mxu0 %vm840_vm3, %v2226_v35  ;;  %3123 = vmatprep.mubr.msk.f32.mxu0 %vm3707_vm0, %v3708_v1 }
 0x88a   : > { %3202 = vmatprep.subr.bf16.mxu0 %v3706_v0 }
 0x88c   : > { %3124 = vmatmul.mubr.msk.f32.vlgmr.msra.gmra.mrb[16].mxu0 %vm840_vm3, %v2223_v37 }
 0x88d   : > { %3139 = vmatprep.mubr.msk.f32.mxu0 %vm3707_vm0, %v3708_v1  ;;  %3204 = vmatpush3.bf16.msra.mxu0 %v3203_v31 }
 0x88e   : > { %3205 = vmatprep.subr.bf16.mxu0 %v3706_v0 }
 0x891   : > { %3207 = vmatpush3.bf16.msra.mxu0 %v3206_v34  ;;  %v2595_v34 = vrot.slane %v4168_v32, %v2594_v33 }
 0x892   : > { %3214 = vmatprep.subr.bf16.mxu0 %v3706_v0 }
 0x8e2   : > { %v1785_v38 = vpop.f32.mrb[10].mxu0 }
 0x8e3   : > { %v3095_v39 = vpop.f32.mrb[11].mxu0  ;;  %v1789_v40 = vsel %vm840_vm3, %v1785_v38, -inf }
 0x8e4   : > { %1790 = vmax.xlane.f32.xlu1 %v1789_v40 }
 0x8f5   : > { %1966 = vrot.lane.b32.xlu1 %v4263_v56, %s3715_s19  ;;  %s4526_s19 = sld [smem:[#allocation24_spill]] }
 0x8fb   : > { %s2917_s28 = sshll.u32 %s4526_s19, 7 }
 0x954   : > { %v1953_v41 = vpop.f32.mrb[12].mxu0 }
 0x955   : > { %v3105_v42 = vpop.f32.mrb[13].mxu0  ;;  %v1957_v43 = vsel %vm840_vm3, %v1953_v41, -inf }
 0x956   : > { %1958 = vmax.xlane.f32.xlu0 %v1957_v43 }
 0x95b   : > { %v2125_v44 = vpop.f32.mrb[14].mxu0 }
 0x95c   : > { %v3115_v45 = vpop.f32.mrb[15].mxu0  ;;  %v2129_v46 = vsel %vm840_vm3, %v2125_v44, -inf }
 0x95d   : > { %2130 = vmax.xlane.f32.xlu0 %v2129_v46 }
 0x95f   : > { %v2297_v47 = vpop.f32.mrb[16].mxu0 }
 0x960   : > { %v3125_v48 = vpop.f32.mrb[17].mxu0  ;;  %v2301_v49 = vsel %vm840_vm3, %v2297_v47, -inf }
 0x961   : > { %2302 = vmax.xlane.f32.xlu1 %v2301_v49  ;;  %v2400_v48 = vsub.s32 3, %v4158_v23 }
 0x963   : > { %v2401_v49 = vrot.slane %v4168_v32, %v2400_v48 }
 0x971   : > { %v1791_v50 = vpop.xlane.xlu1 %1790 }
 0x972   : > { %2138 = vrot.lane.b32.xlu1 %v4263_v56, %s3713_s11  ;;  %v1792_v51 = vsub.f32 %v1785_v38, %v1791_v50 }
 0x973   : > { %1798 = vrot.lane.b32.xlu0 %v4263_v56, %s3712_s23  ;;  %s3603_s23 = scalar_lea.vmem %s3602_s16, 256 }
 0x974   : > { %v1793_v52 = vmul.f32 1.442695, %v1792_v51  ;;  %p3605_p4 = scmp.lt.s32.totalorder %s3603_s23, %s3597_s13 }
 0x975   : > { %v1967_v57 = vpop.permute.xlu1 %1966 }
 0x976   : > { %3377 = vpow2.f32 %v1793_v52  ;;  %p3606_p11 = por %p3605_p4, %p3604_p2 }
 0x977   : > { %2310 = vrot.lane.b32.xlu0 %v4263_v56, %s3714_s6  ;;  %s4525_s6 = sld [smem:[#allocation34_spill]] }
 0x978   : > { %p3607_p6 = pnand %p3606_p11, %p3600_p5 }
 0x97d   : > { %v2913_v28 = vld [vmem:[%s4525_s6] ss:$0 sm:$0xff] }
 0x980   : > { %v3378_v63 = vpop.eup %3377 }
 0x981   : > { %v1795_v6 = vsel %vm840_vm3, %v3378_v63, 0.0 }
 0x9e3   : > { %v1959_v53 = vpop.xlane.xlu0 %1958 }
 0x9e4   : > { %v1960_v54 = vsub.f32 %v1953_v41, %v1959_v53 }
 0x9e6   : > { %v1961_v55 = vmul.f32 1.442695, %v1960_v54 }
 0x9e8   : > { %3379 = vpow2.f32 %v1961_v55 }
 0x9ea   : > { %v2131_v58 = vpop.xlane.xlu0 %2130 }
 0x9eb   : > { %v2132_v59 = vsub.f32 %v2125_v44, %v2131_v58 }
 0x9ed   : > { %v2133_v60 = vmul.f32 1.442695, %v2132_v59 }
 0x9ee   : > { %v1799_v61 = vpop.permute.xlu0 %1798  ;;  %v2303_v62 = vpop.xlane.xlu1 %2302 }
 0x9ef   : > { %3381 = vpow2.f32 %v2133_v60  ;;  %v2304_v2 = vsub.f32 %v2297_v47, %v2303_v62  ;;  %3097 = vmatpush3.msra.mxu1 %v1799_v61  ;;  %v2500_v61 = vld [vmem:[#allocation14 + $0x8] sm:$0xff] }
 0x9f0   : > { %3099 = vmatmul.mubr.msk.f32.vlgmr.msra.gmra.mrb[16].mxu1 %vm840_vm3, %v3378_v63  ;;  %3106 = vmatprep.subr.mxu1 %v3708_v1  ;;  %v2501_v63 = vld [vmem:[#allocation14 + $0x10] sm:$0xff] }
 0x9f1   : > { %v2305_v56 = vmul.f32 1.442695, %v2304_v2  ;;  %3107 = vmatpush3.msra.mxu1 %v1967_v57  ;;  %3108 = vmatprep.mubr.msk.f32.mxu1 %vm3707_vm0, %v3708_v1  ;;  %v2502_v2 = vld [vmem:[#allocation14 + $0x18] sm:$0xff] }
 0x9f2   : > { %v3380_v3 = vpop.eup %3379  ;;  %v2139_v4 = vpop.permute.xlu1 %2138  ;;  %3116 = vmatprep.subr.mxu1 %v3708_v1 }
 0x9f3   : > { %3383 = vpow2.f32 %v2305_v56  ;;  %v1963_v5 = vsel %vm840_vm3, %v3380_v3, 0.0  ;;  %v2311_v8 = vpop.permute.xlu0 %2310  ;;  %v3212_v56 = vpack.c.bf16 %v2502_v2, %v2501_v63 }
 0x9f4   : > { %3109 = vmatmul.mubr.msk.f32.vlgmr.msra.gmra.mrb[18].mxu1 %vm840_vm3, %v3380_v3  ;;  %1964 = vadd.xlane.f32.xlu1 %v1963_v5  ;;  %v2585_v3 = vld [vmem:[%s4524_s21 + $0x8] sm:$0xff] }
 0x9f5   : > { %3117 = vmatpush3.msra.mxu1 %v2139_v4  ;;  %3118 = vmatprep.mubr.msk.f32.mxu1 %vm3707_vm0, %v3708_v1  ;;  %v2586_v4 = vld [vmem:[%s4524_s21 + $0x10] sm:$0xff] }
 0x9f6   : > { %3126 = vmatprep.subr.mxu1 %v3708_v1 }
 0x9f8   : > { %1796 = vadd.xlane.f32.xlu1 %v1795_v6  ;;  %v2587_v6 = vld [vmem:[%s4524_s21 + $0x18] sm:$0xff] }
 0x9f9   : > { %v3382_v7 = vpop.eup %3381 }
 0x9fa   : > { %3119 = vmatmul.mubr.msk.f32.vlgmr.msra.gmra.mrb[20].mxu1 %vm840_vm3, %v3382_v7  ;;  %v2135_v9 = vsel %vm840_vm3, %v3382_v7, 0.0  ;;  %v3218_v7 = vpack.c.bf16 %v2587_v6, %v2586_v4 }
 0x9fb   : > { %3127 = vmatpush3.msra.mxu1 %v2311_v8  ;;  %2136 = vadd.xlane.f32.xlu0 %v2135_v9  ;;  %v2588_v8 = vld [vmem:[%s4524_s21 + $0x20] sm:$0xff]  ;;  %v2589_v9 = vld [vmem:[%s4524_s21 + $0x28] sm:$0xff] }
 0x9fc   : > { %3128 = vmatprep.mubr.msk.f32.mxu1 %vm3707_vm0, %v3708_v1  ;;  %3208 = vmatprep.subr.bf16.mxu1 %v3706_v0 }
 0x9fd   : > { %v3384_v10 = vpop.eup %3383 }
 0x9fe   : > { %3129 = vmatmul.mubr.msk.f32.vlgmr.msra.gmra.mrb[22].mxu1 %vm840_vm3, %v3384_v10  ;;  %v2307_v16 = vsel %vm840_vm3, %v3384_v10, 0.0  ;;  %v3221_v10 = vpack.c.bf16 %v2589_v9, %v2588_v8 }
 0x9ff   : > { %2308 = vadd.xlane.f32.xlu0 %v2307_v16  ;;  %3150 = vmatprep.mubr.msk.f32.mxu1 %vm3707_vm0, %v3708_v1 }
 0xa81   : > { %v1965_v11 = vpop.xlane.xlu1 %1964 }
 0xa85   : > { %v1797_v12 = vpop.xlane.xlu1 %1796 }
 0xa86   : > { %3385 = vrcp.f32 %v1797_v12 }
 0xa87   : > { %3387 = vrcp.f32 %v1965_v11 }
 0xa88   : > { %v2137_v13 = vpop.xlane.xlu0 %2136 }
 0xa89   : > { %3389 = vrcp.f32 %v2137_v13  ;;  %v2491_v13 = vsub.s32 7, %v4158_v23 }
 0xa8c   : > { %v2309_v17 = vpop.xlane.xlu0 %2308 }
 0xa8d   : > { %3391 = vrcp.f32 %v2309_v17 }
 0xa90   : > { %v3386_v14 = vpop.eup %3385 }
 0xa91   : > { %v3388_v20 = vpop.eup %3387 }
 0xa93   : > { %v3390_v35 = vpop.eup %3389 }
 0xa97   : > { %v3392_v40 = vpop.eup %3391 }
 0xac3   : > { %v1870_v15 = vpop.f32.mrb[16].mxu1 }
 0xac4   : > { %v1875_v18 = vmul.f32 %v3386_v14, %v1870_v15  ;;  %v3100_v19 = vpop.f32.mrb[17].mxu1  ;;  %v580_v14 = vld [vmem:[#allocation16 + $0x8] sm:$0x7]  ;;  %v2492_v15 = vrot.slane %v4168_v32, %v2491_v13 }
 0xac5   : > { %v2687_v48 = vrot.slane %v580_v14, %v4192_v36 }
 0xac6   : > { %1876 = vst.msk [vmem:[#allocation4] sm:$0xff] %vm840_vm3, %v1875_v18  ;;  %v2497_v18 = vrot.slane %v580_v14, %v4161_v24 }
 0xac7   : > { %v2038_v21 = vpop.f32.mrb[18].mxu1 }
 0xac8   : > { %v2043_v29 = vmul.f32 %v3388_v20, %v2038_v21  ;;  %v3110_v30 = vpop.f32.mrb[19].mxu1 }
 0xaca   : > { %2045 = vrot.lane.b32.xlu0 %v2043_v29, %s3716_s22  ;;  %s4527_s22 = sld [smem:[#allocation35_spill]] }
 0xacd   : > { %v2210_v37 = vpop.f32.mrb[20].mxu1 }
 0xace   : > { %v2215_v38 = vmul.f32 %v3390_v35, %v2210_v37  ;;  %v3120_v39 = vpop.f32.mrb[21].mxu1 }
 0xad0   : > { %2217 = vrot.lane.b32.xlu1 %v2215_v38, %s3717_s9  ;;  %s4415_s9 = scalar_lea.hbm %s4527_s22, %s2917_s28 }
 0xad1   : > { %v2382_v41 = vpop.f32.mrb[22].mxu1 }
 0xad2   : > { %v2387_v42 = vmul.f32 %v3392_v40, %v2382_v41  ;;  %v3130_v43 = vpop.f32.mrb[23].mxu1 }
 0xad4   : > { %2389 = vrot.lane.b32.xlu1 %v2387_v42, %s3718_s12  ;;  %s2696_s12 = scalar_lea.sflag [#allocation7], %s4076_s17 }
 0xb3c   : > { %v2046_v44 = vpop.permute.xlu0 %2045 }
 0xb3d   : > { %2048 = vst.msk [vmem:[#allocation4] sm:$0xff] %vm1176_vm4, %v2046_v44 }
 0xb42   : > { %v2218_v45 = vpop.permute.xlu1 %2217 }
 0xb43   : > { %2220 = vst.msk [vmem:[#allocation4] sm:$0xff] %vm1349_vm5, %v2218_v45 }
 0xb46   : > { %v2390_v46 = vpop.permute.xlu1 %2389 }
 0xb47   : > { %2392 = vst.msk [vmem:[#allocation4] sm:$0xff] %vm1522_vm6, %v2390_v46 }
 0xb4e   : > { %v2393_v47 = vld [vmem:[#allocation4] sm:$0xff] }
 0xb4f   : > { %3140 = vmatmul.mubr.msk.f32.vlgmr.msra.gmra.mrb[18].mxu0 %vm596_vm1, %v2393_v47 }
 0xb50   : > { %3169 = vmatprep.mubr.msk.f32.mxu0 %vm3707_vm0, %v3708_v1  ;;  %v2499_v1 = vld [vmem:[#allocation14] sm:$0xff] }
 0xb51   : > { %v3209_v62 = vpack.c.bf16 %v2500_v61, %v2499_v1 }
 0xb53   : > { %3210 = vmatpush3.bf16.msra.mxu1 %v3209_v62 }
 0xb54   : > { %3211 = vmatprep.subr.bf16.mxu1 %v3706_v0 }
 0xb57   : > { %3213 = vmatpush3.bf16.msra.mxu1 %v3212_v56 }
 0xc22   : > { %v2471_v50 = vpop.f32.mrb[18].mxu0 }
 0xc23   : > { %v2472_v51 = vadd.f32 %v2471_v50, %v2401_v49  ;;  %v3141_v52 = vpop.f32.mrb[19].mxu0  ;;  %v2692_v50 = vrot.slane %v580_v14, %v1637_v25 }
 0xc25   : > { %v2475_v53 = vadd.f32 %v2472_v51, %v4283_v22  ;;  %v2584_v22 = vld [vmem:[%s4524_s21] sm:$0xff] }
 0xc26   : > { %v3215_v5 = vpack.c.bf16 %v2585_v3, %v2584_v22 }
 0xc27   : > { %v2476_v54 = vsel %vm596_vm1, %v2475_v53, 0.0 }
 0xc28   : > { %2477 = vadd.xlane.f32.xlu0 %v2476_v54  ;;  %3216 = vmatpush3.bf16.msra.mxu0 %v3215_v5 }
 0xc29   : > { %3217 = vmatprep.subr.bf16.mxu0 %v3706_v0 }
 0xc2c   : > { %3219 = vmatpush3.bf16.msra.mxu0 %v3218_v7 }
 0xc2d   : > { %3220 = vmatprep.subr.bf16.mxu0 %v3706_v0 }
 0xc30   : > { %3222 = vmatpush3.bf16.msra.mxu0 %v3221_v10 }
 0xc31   : > { %3223 = vmatprep.subr.bf16.mxu0 %v3706_v0  ;;  %v2590_v0 = vld [vmem:[%s4524_s21 + $0x30] sm:$0xff] }
 0xc32   : > { %v3224_v27 = vpack.c.bf16 %v2591_v26, %v2590_v0 }
 0xc34   : > { %3225 = vmatpush3.bf16.msra.mxu0 %v3224_v27 }
 0xcb5   : > { %v2478_v55 = vpop.xlane.xlu0 %2477 }
 0xcb6   : > { %v2479_v57 = vmul.f32 0.03125, %v2478_v55 }
 0xcb8   : > { %v2480_v58 = vsub.f32 %v2475_v53, %v2479_v57 }
 0xcba   : > { %v2481_v59 = vmul.f32 %v2480_v58, %v2480_v58 }
 0xcbc   : > { %v2482_v60 = vsel %vm596_vm1, %v2481_v59, 0.0 }
 0xcbd   : > { %2483 = vadd.xlane.f32.xlu1 %v2482_v60 }
 0xd4a   : > { %v2484_v16 = vpop.xlane.xlu1 %2483 }
 0xd4b   : > { %v2485_v11 = vmul.f32 0.03125, %v2484_v16 }
 0xd4d   : > { %v2486_v12 = vadd.f32 1e-05, %v2485_v11 }
 0xd4f   : > { %3393 = vrsqrt.f32 %v2486_v12 }
 0xd59   : > { %v3394_v17 = vpop.eup %3393 }
 0xd5a   : > { %v2488_v19 = vmul.f32 %v3394_v17, %v2480_v58 }
 0xd5c   : > { %v2493_v20 = vmul.f32 %v2492_v15, %v2488_v19 }
 0xd5e   : > { %v2498_v21 = vadd.f32 %v2497_v18, %v2493_v20 }
 0xd60   : > { %3151 = vmatmul.mubr.msk.f32.vlgmr.msra.gmra.mrb[24].mxu1 %vm596_vm1, %v2498_v21 }
 0xe33   : > { %v2579_v24 = vpop.f32.mrb[24].mxu1 }
 0xe34   : > { %v2580_v29 = vadd.f32 %v2913_v28, %v2579_v24  ;;  %v3152_v30 = vpop.f32.mrb[25].mxu1 }
 0xe36   : > { %v2583_v31 = vmax.f32 %v2580_v29, 0.0 }
 0xe38   : > { %3170 = vmatmul.mubr.msk.f32.vlgmr.msra.gmra.mrb[20].mxu0 %vm670_vm2, %v2583_v31 }
 0xf0b   : > { %v2666_v35 = vpop.f32.mrb[20].mxu0 }
 0xf0c   : > { %v2667_v37 = vadd.f32 %v2666_v35, %v2595_v34  ;;  %v3171_v38 = vpop.f32.mrb[21].mxu0 }
 0xf0e   : > { %v2670_v39 = vadd.f32 %v2667_v37, %v2498_v21 }
 0xf10   : > { %v2671_v40 = vsel %vm596_vm1, %v2670_v39, 0.0 }
 0xf11   : > { %2672 = vadd.xlane.f32.xlu0 %v2671_v40 }
 0xf9e   : > { %v2673_v41 = vpop.xlane.xlu0 %2672 }
 0xf9f   : > { %v2674_v42 = vmul.f32 0.03125, %v2673_v41 }
 0xfa1   : > { %v2675_v43 = vsub.f32 %v2670_v39, %v2674_v42 }
 0xfa3   : > { %v2676_v44 = vmul.f32 %v2675_v43, %v2675_v43 }
 0xfa5   : > { %v2677_v45 = vsel %vm596_vm1, %v2676_v44, 0.0 }
 0xfa6   : > { %2678 = vadd.xlane.f32.xlu0 %v2677_v45 }
0x1033   : > { %v2679_v46 = vpop.xlane.xlu0 %2678 }
0x1034   : > { %v2680_v47 = vmul.f32 0.03125, %v2679_v46 }
0x1036   : > { %v2681_v32 = vadd.f32 1e-05, %v2680_v47 }
0x1038   : > { %3395 = vrsqrt.f32 %v2681_v32 }
0x1042   : > { %v3396_v49 = vpop.eup %3395 }
0x1043   : > { %v2683_v51 = vmul.f32 %v3396_v49, %v2675_v43 }
0x1045   : > { %v2688_v52 = vmul.f32 %v2687_v48, %v2683_v51 }
0x1047   : > { %v2693_v53 = vadd.f32 %v2692_v50, %v2688_v52 }
0x1049   : > { %2694 = vst.msk [vmem:[%s578_s8] sm:$0xff] %vm596_vm1, %v2693_v53 }
0x104a   : > { %3610 = shalt.err (!%p3607_p6)
}
0x104b   : > { %s3611_s17 = scalar_lea.hbm %s4415_s9, 128  ;;  %s3615_s19 = scalar_lea.hbm %s4527_s22, 256 }
0x104c   : > { %p3612_p10 = scmp.ne.s32.totalorder %s4415_s9, %s3611_s17  ;;  %p3616_p8 = scmp.lt.u32.totalorder %s4415_s9, %s4527_s22 }
0x104d   : > { %p3617_p3 = scmp.lt.u32.totalorder %s3615_s19, %s3611_s17  ;;  %p3619_p13 = scmp.lt.u32.totalorder %s3611_s17, %s4415_s9 }
0x104e   : > { %p3613_p1 = pnand %p3612_p10, %p4528_p0 }
0x104f   : > { %p3618_p12 = por %p3617_p3, %p3616_p8 }
0x1050   : > { %p3614_p9 = pneg %p3613_p1 }
0x1051   : > { %p3620_p7 = por %p3619_p13, %p3618_p12 }
0x1053   : > { %p3621_p5 = pnand %p3620_p7, %p3614_p9 }
0x1055   : > { %3624 = shalt.err (!%p3621_p5)
}
0x1056   : > { %3250 = dma.vmem_to_hbm [thread:$0]  (%p4528_p0), %s4417_s5, 128, %s4415_s9, %s2696_s12  }
0x1057 PF: > { %s2722_s2 = sand.u32 1, %s3675_s25   ;;  %p4529_p2 = scmp.ne.s32.totalorder %s4511_s10, 0 }
0x1058   : > { %p4530_p4 = scmp.ge.s32.totalorder %s3695_s30, 2  ;;  %s2723_s14 = scalar_lea.sflag [#allocation7], %s2722_s2 }
0x105a   : > { %p3276_p11 = pnand %p4530_p4, %p4529_p2 }
0x105c   : > { %3670 = dma.done.wait (!%p3276_p11), %s2723_s14, 128  }
0x105d   : > { %3672 = vsyncadd (!%p3276_p11), %s2723_s14, 4294967168  ;;  %s34_s30 = sadd.s32 1, %s3695_s30   ;;  %s4531_s25 = smov %s3679_s26 }
0x105e   : > { %p31_p6 = scmp.ge.s32.totalorder %s34_s30, 4   ;;  %s4532_s26 = smov %s3683_s27 }
0x105f   : > { %s4533_s27 = smov %s3996_s4  ;;  %s4534_s28 = smov %s3691_s29 }
0x1060   : > { %s4535_s29 = smov %s4537_s18  ;;  %33 = sbr.rel (!%p31_p6) target bundleno = 22 (0x16), region = 155 }
0x1067   :  { %2728 = vsyncpa [#allocation6], 1 }
0x1068   :  { %2730 = vsyncpa [#allocation6 + $0x1], 1 }
0x1069   :  { %2731 = vsyncpa [#allocation9], 1 }
0x106a   :  { %2733 = vsyncpa [#allocation9 + $0x1], 1 }
0x106b   :  { %2734 = vsyncpa [#allocation12], 1 }
0x106c   :  { %2735 = vsyncpa [#allocation15], 1 }
0x106d   :  { %2736 = vsyncpa [#allocation7], 1 }
0x106e   :  { %2738 = vsyncpa [#allocation7 + $0x1], 1 }

</bundles_post_ra>
